<compile_context>
chip_gen: v6e
topology: v6e:2x2x1
jax: 0.10.0
libtpu: 0.0.40
codegen_flags: <defaults>
</compile_context>

<pallas_src>
import functools

import jax
import jax.numpy as jnp
import numpy as np
from jax import lax
from jax.experimental import pallas as pl
from jax.experimental.pallas import tpu as pltpu


# Static hyper-parameters of _LargeCNN.
_C1_K, _C1_STRIDE, _C1_PAD, _C1_OUT = 400, 50, 175, 64
_C1_TAPS = _C1_K // _C1_STRIDE          # 8 non-overlapping 50-wide chunks per window
_P1_WIN = 4                             # pool1: kernel 4, stride 4, no pad
_CK = 6                                 # conv2/3/4 kernel width
_CK_PAD_L = 2                           # PyTorch padding='same' for k=6 -> (2, 3)
_P2_WIN, _P2_PAD = 2, 1                 # pool2: kernel 2, stride 2, pad 1


# ---------------------------------------------------------------------------
# Fused kernel: conv1+BN+ReLU -> pool1 -> conv2/3/4 (+BN+ReLU each) -> pool2
# ---------------------------------------------------------------------------

def _large_cnn_kernel(xcol_ref, w1_ref, s1_ref, w2_ref, s2_ref, w3_ref, s3_ref,
                      w4_ref, s4_ref, o_ref, pad64_ref, pad128_ref,
                      *, t1, t2, t3):
    """xcol_ref: (bb, t1, 400) bf16 host-im2col'd conv1 input.
    w1_ref: (400, 64) bf16, wN_ref: (6*Cin, 128) bf16 (BN scale folded).
    sN_ref: (1, Cout) f32 BN shifts.  o_ref: (bb, t3, 128) f32.
    padNN_ref: bf16 VMEM halo scratch (bb, t2+5, C)."""
    bb = xcol_ref.shape[0]
    k1 = xcol_ref.shape[2]
    c1 = w1_ref.shape[1]

    # ---- conv1 + BN shift + ReLU: one (bb*t1, 400) @ (400, 64) MXU matmul. ----
    x = xcol_ref[...].reshape(bb * t1, k1)
    h = jnp.dot(x, w1_ref[...], preferred_element_type=jnp.float32)
    h = jnp.maximum(h + s1_ref[...], 0.0).reshape(bb, t1, c1)

    # ---- pool1 (k=4, stride 4), fused -- no HBM round trip. ----
    h = jnp.max(h[:, :t2 * _P1_WIN, :].reshape(bb, t2, _P1_WIN, c1), axis=2)
    h = h.astype(jnp.bfloat16)                                 # (bb, t2, 64)

    # dropout(p=0.5): identity in eval mode.

    def conv_same(pad_ref, hin, w_ref, s_ref):
        # 'same' conv (k=6, pad (2,3)) as ONE merged-K matmul over a bf16 halo buffer.
        cin = hin.shape[2]
        cout = w_ref.shape[1]
        # Zero only the 5 halo rows; write the interior once.
        pad_ref[:, 0:_CK_PAD_L, :] = jnp.zeros((bb, _CK_PAD_L, cin), jnp.bfloat16)
        pad_ref[:, _CK_PAD_L:_CK_PAD_L + t2, :] = hin
        pad_ref[:, _CK_PAD_L + t2:, :] = jnp.zeros(
            (bb, _CK - 1 - _CK_PAD_L, cin), jnp.bfloat16)
        # Merged-K im2col: concat 6 shifted bf16 slices along lanes -> (bb, t2, 6*cin).
        xcol = jnp.concatenate(
            [pad_ref[:, j:j + t2, :] for j in range(_CK)], axis=-1)
        acc = jnp.dot(xcol.reshape(bb * t2, _CK * cin), w_ref[...],
                      preferred_element_type=jnp.float32)
        out = jnp.maximum(acc + s_ref[...], 0.0).reshape(bb, t2, cout)
        return out.astype(jnp.bfloat16)

    h = conv_same(pad64_ref, h, w2_ref, s2_ref)      # 64  -> 128
    h = conv_same(pad128_ref, h, w3_ref, s3_ref)     # 128 -> 128
    h = conv_same(pad128_ref, h, w4_ref, s4_ref)     # 128 -> 128

    # ---- pool2 (k=2, stride 2, pad 1) directly on the register value. ----
    # Zero padding matches PyTorch's -inf pad because post-ReLU values are >= 0.
    c4 = h.shape[2]
    zrow = jnp.zeros((bb, 1, c4), h.dtype)
    hp = jnp.concatenate([zrow, h, zrow], axis=1)[:, :t3 * _P2_WIN, :]
    pooled = jnp.max(hp.reshape(bb, t3, _P2_WIN, c4), axis=2)
    o_ref[...] = pooled.astype(o_ref.dtype)


def _pick_batch_block(batch, t1):
    # Target ~1024 matmul rows per grid step; keep >= 2 grid steps when possible so
    # both v7x TensorCores get work via the "parallel" grid axis.
    target_rows = 1024
    bb = max(1, min(batch, target_rows // max(t1, 1)))
    if batch > 1 and -(-batch // bb) < 2:
        bb = -(-batch // 2)
    return bb


def large_cnn_forward(x_nchw, params):
    """x_nchw: (B, 1, 1, W) -> (B, 128, 1, T_out), matching _LargeCNN.forward (eval)."""
    B, c_in, h_in, W = x_nchw.shape
    assert c_in == 1 and h_in == 1, "DeepSleepNet large CNN expects (B, 1, 1, W)"
    x = x_nchw.reshape(B, W).astype(jnp.float32)

    # Host-side im2col for conv1 (k=400, stride=50, pad=175): lane-dense (B, T1, 400).
    t1 = (W + 2 * _C1_PAD - _C1_K) // _C1_STRIDE + 1
    n_chunks = t1 + _C1_TAPS - 1
    pad_r = n_chunks * _C1_STRIDE - W - _C1_PAD
    chunks = jnp.pad(x, ((0, 0), (_C1_PAD, pad_r))).reshape(B, n_chunks, _C1_STRIDE)
    xcol = jnp.concatenate([chunks[:, j:j + t1, :] for j in range(_C1_TAPS)],
                           axis=-1).astype(jnp.bfloat16)        # (B, t1, 400)

    t2 = t1 // _P1_WIN
    t3 = t2 // _P2_WIN + 1
    bb = _pick_batch_block(B, t1)

    kernel = functools.partial(_large_cnn_kernel, t1=t1, t2=t2, t3=t3)
    out = pl.pallas_call(
        kernel,
        out_shape=jax.ShapeDtypeStruct((B, t3, 128), jnp.float32),
        grid=(pl.cdiv(B, bb),),
        in_specs=[
            pl.BlockSpec((bb, t1, _C1_K), lambda i: (i, 0, 0)),
            pl.BlockSpec((_C1_K, _C1_OUT), lambda i: (0, 0)),
            pl.BlockSpec((1, _C1_OUT), lambda i: (0, 0)),
            pl.BlockSpec((_CK * 64, 128), lambda i: (0, 0)),
            pl.BlockSpec((1, 128), lambda i: (0, 0)),
            pl.BlockSpec((_CK * 128, 128), lambda i: (0, 0)),
            pl.BlockSpec((1, 128), lambda i: (0, 0)),
            pl.BlockSpec((_CK * 128, 128), lambda i: (0, 0)),
            pl.BlockSpec((1, 128), lambda i: (0, 0)),
        ],
        out_specs=pl.BlockSpec((bb, t3, 128), lambda i: (i, 0, 0)),
        scratch_shapes=[
            pltpu.VMEM((bb, t2 + _CK - 1, 64), jnp.bfloat16),
            pltpu.VMEM((bb, t2 + _CK - 1, 128), jnp.bfloat16),
        ],
        compiler_params=pltpu.CompilerParams(
            dimension_semantics=("parallel",),
            vmem_limit_bytes=48 * 1024 * 1024,   # fits v7x's 64 MiB; plenty on v5e/v6e
        ),
    )(xcol, params["w1"], params["b1"], params["w2"], params["b2"],
      params["w3"], params["b3"], params["w4"], params["b4"])

    # Back to NCHW: (B, 128, 1, T3).
    return jnp.transpose(out, (0, 2, 1)).reshape(B, 128, 1, t3)


# ---------------------------------------------------------------------------
# Parameters (deterministic, synthetic); BN scale folded into bf16 weights.
# Also returns f32 copies for the pure-JAX reference.
# ---------------------------------------------------------------------------

def _bn_fold(gamma, beta, mean, var, eps=1e-5):
    scale = gamma / jnp.sqrt(var + eps)
    shift = beta - mean * scale
    return scale, shift


def init_params(key):
    keys = jax.random.split(key, 20)

    def bn(kg, kb, km, kv, n):
        gamma = 1.0 + 0.1 * jax.random.normal(kg, (n,), jnp.float32)
        beta = 0.1 * jax.random.normal(kb, (n,), jnp.float32)
        mean = 0.1 * jax.random.normal(km, (n,), jnp.float32)
        var = jax.random.uniform(kv, (n,), jnp.float32, 0.5, 1.5)
        return _bn_fold(gamma, beta, mean, var)

    params, ref = {}, {}

    # conv1: torch weight (64, 1, 1, 400) -> (400, 64) matmul matrix, BN scale folded.
    w1 = 0.05 * jax.random.normal(keys[0], (64, 1, 1, 400), jnp.float32)
    s1, b1 = bn(keys[1], keys[2], keys[3], keys[4], 64)
    w1_mat = w1.reshape(64, _C1_K).T * s1[None, :]               # (400, 64) f32
    params["w1"] = w1_mat.astype(jnp.bfloat16)
    params["b1"] = b1.reshape(1, 64)
    ref["w1"] = w1_mat.reshape(_C1_K, 1, 64)                     # WIO for lax.conv
    ref["b1"] = b1

    def conv_k6(kw, cin, cout, kbn):
        w = 0.05 * jax.random.normal(kw, (cout, cin, 1, _CK), jnp.float32)
        s, b = bn(*kbn, cout)
        taps = jnp.transpose(w[:, :, 0, :], (2, 1, 0)) * s[None, None, :]  # (6,cin,cout)
        mat = taps.reshape(_CK * cin, cout)
        return mat.astype(jnp.bfloat16), b.reshape(1, cout), taps, b

    params["w2"], params["b2"], ref["w2"], ref["b2"] = conv_k6(keys[5], 64, 128, keys[6:10])
    params["w3"], params["b3"], ref["w3"], ref["b3"] = conv_k6(keys[10], 128, 128, keys[11:15])
    params["w4"], params["b4"], ref["w4"], ref["b4"] = conv_k6(keys[15], 128, 128, keys[16:20])
    return params, ref


# ---------------------------------------------------------------------------
# Pure-JAX f32 reference (same BN-folded math, real conv/pool primitives).
# ---------------------------------------------------------------------------

def reference_forward(x_nchw, ref):
    B, _, _, W = x_nchw.shape
    dn = ("NWC", "WIO", "NWC")
    h = x_nchw.reshape(B, W, 1).astype(jnp.float32)
    h = lax.conv_general_dilated(h, ref["w1"], (_C1_STRIDE,), [(_C1_PAD, _C1_PAD)],
                                 dimension_numbers=dn)
    h = jax.nn.relu(h + ref["b1"])
    t2 = h.shape[1] // _P1_WIN
    h = jnp.max(h[:, :t2 * _P1_WIN, :].reshape(B, t2, _P1_WIN, -1), axis=2)
    for wk, bk in (("w2", "b2"), ("w3", "b3"), ("w4", "b4")):
        h = lax.conv_general_dilated(h, ref[wk], (1,),
                                     [(_CK_PAD_L, _CK - 1 - _CK_PAD_L)],
                                     dimension_numbers=dn)
        h = jax.nn.relu(h + ref[bk])
    t3 = h.shape[1] // _P2_WIN + 1
    hp = jnp.pad(h, ((0, 0), (_P2_PAD, _P2_PAD), (0, 0)), constant_values=-jnp.inf)
    hp = hp[:, :t3 * _P2_WIN, :]
    h = jnp.max(hp.reshape(B, t3, _P2_WIN, -1), axis=2)
    return jnp.transpose(h, (0, 2, 1)).reshape(B, -1, 1, t3)


if __name__ == "__main__":
    key = jax.random.PRNGKey(0)
    k_in, k_par = jax.random.split(key)

    # Small but valid shape: conv1 (k=400, pad=175) needs W + 350 >= 400.
    B, W = 2, 800
    x = jax.random.normal(k_in, (B, 1, 1, W), jnp.float32)
    params, ref_params = init_params(k_par)

    out = jax.jit(large_cnn_forward)(x, params)
    out = jax.block_until_ready(out)

    # Expected: T1 = 16 -> pool1 -> 4 -> conv2/3/4 -> pool2 -> 3 => (2, 128, 1, 3)
    t1 = (W + 2 * _C1_PAD - _C1_K) // _C1_STRIDE + 1
    t3 = (t1 // _P1_WIN) // _P2_WIN + 1
    assert out.shape == (B, 128, 1, t3), out.shape
    assert bool(jnp.all(jnp.isfinite(out)))

    # Numerical check vs f32 reference (bf16 weights/activations => ~1e-2 level error).
    ref = reference_forward(x, ref_params)
    np.testing.assert_allclose(np.asarray(out), np.asarray(ref), rtol=5e-2, atol=5e-2)

    print("KERNEL_OK")
</pallas_src>

<mosaic_0001>
module attributes {stable_mosaic.version = 11 : i64} {
  func.func @_large_cnn_kernel(%arg0: i32, %arg1: memref<1x16x400xbf16, #tpu.memory_space<vmem>>, %arg2: memref<400x64xbf16, #tpu.memory_space<vmem>>, %arg3: memref<1x64xf32, #tpu.memory_space<vmem>>, %arg4: memref<384x128xbf16, #tpu.memory_space<vmem>>, %arg5: memref<1x128xf32, #tpu.memory_space<vmem>>, %arg6: memref<768x128xbf16, #tpu.memory_space<vmem>>, %arg7: memref<1x128xf32, #tpu.memory_space<vmem>>, %arg8: memref<768x128xbf16, #tpu.memory_space<vmem>>, %arg9: memref<1x128xf32, #tpu.memory_space<vmem>>, %arg10: memref<1x3x128xf32, #tpu.memory_space<vmem>>, %arg11: memref<1x9x64xbf16, #tpu.memory_space<vmem>>, %arg12: memref<1x9x128xbf16, #tpu.memory_space<vmem>>) attributes {dimension_semantics = [#tpu.dimension_semantics<parallel>], iteration_bounds = array<i64: 2>, scalar_prefetch = 0 : i64, scratch_operands = 2 : i64, tpu.core_type = #tpu.core_type<tc>, window_params = [{transform_indices = @transform_0, window_bounds = array<i64: 1, 16, 400>}, {pipeline_mode = #tpu.pipeline_mode<synchronous>, transform_indices = @transform_1, window_bounds = array<i64: 400, 64>}, {pipeline_mode = #tpu.pipeline_mode<synchronous>, transform_indices = @transform_2, window_bounds = array<i64: 1, 64>}, {pipeline_mode = #tpu.pipeline_mode<synchronous>, transform_indices = @transform_3, window_bounds = array<i64: 384, 128>}, {pipeline_mode = #tpu.pipeline_mode<synchronous>, transform_indices = @transform_4, window_bounds = array<i64: 1, 128>}, {pipeline_mode = #tpu.pipeline_mode<synchronous>, transform_indices = @transform_5, window_bounds = array<i64: 768, 128>}, {pipeline_mode = #tpu.pipeline_mode<synchronous>, transform_indices = @transform_6, window_bounds = array<i64: 1, 128>}, {pipeline_mode = #tpu.pipeline_mode<synchronous>, transform_indices = @transform_7, window_bounds = array<i64: 768, 128>}, {pipeline_mode = #tpu.pipeline_mode<synchronous>, transform_indices = @transform_8, window_bounds = array<i64: 1, 128>}, {transform_indices = @transform_9, window_bounds = array<i64: 1, 3, 128>}]} {
    %c0 = arith.constant 0 : index
    %c0_0 = arith.constant 0 : index
    %c0_1 = arith.constant 0 : index
    %0 = vector.load %arg1[%c0, %c0_0, %c0_1] : memref<1x16x400xbf16, #tpu.memory_space<vmem>>, vector<1x16x400xbf16>
    %1 = vector.shape_cast %0 : vector<1x16x400xbf16> to vector<16x400xbf16>
    %c0_2 = arith.constant 0 : index
    %c0_3 = arith.constant 0 : index
    %2 = vector.load %arg2[%c0_2, %c0_3] : memref<400x64xbf16, #tpu.memory_space<vmem>>, vector<400x64xbf16>
    %cst = arith.constant dense<0.000000e+00> : vector<16x64xf32>
    %3 = tpu.matmul %1, %2, %cst {dimension_numbers = #tpu.dot_dimension_numbers<[1], [0], [0], [1], [0, 0, 1, 1], [], []>} : vector<16x400xbf16>, vector<400x64xbf16>, vector<16x64xf32> -> vector<16x64xf32>
    %c0_4 = arith.constant 0 : index
    %c0_5 = arith.constant 0 : index
    %4 = vector.load %arg3[%c0_4, %c0_5] : memref<1x64xf32, #tpu.memory_space<vmem>>, vector<1x64xf32>
    %5 = vector.broadcast %4 : vector<1x64xf32> to vector<16x64xf32>
    %6 = arith.addf %3, %5 : vector<16x64xf32>
    %cst_6 = arith.constant 0.000000e+00 : f32
    %7 = vector.broadcast %cst_6 : f32 to vector<16x64xf32>
    %8 = arith.maximumf %6, %7 : vector<16x64xf32>
    %9 = vector.shape_cast %8 : vector<16x64xf32> to vector<1x16x64xf32>
    %10 = vector.shape_cast %9 : vector<1x16x64xf32> to vector<1x4x4x64xf32>
    %cst_7 = arith.constant dense<0xFF800000> : vector<1x4x64xf32>
    %11 = vector.multi_reduction <maximumf>, %10, %cst_7 [2] : vector<1x4x4x64xf32> to vector<1x4x64xf32>
    %12 = arith.truncf %11 : vector<1x4x64xf32> to vector<1x4x64xbf16>
    %cst_8 = arith.constant 0.000000e+00 : bf16
    %13 = vector.broadcast %cst_8 : bf16 to vector<1x2x64xbf16>
    %c0_9 = arith.constant 0 : index
    %c0_10 = arith.constant 0 : index
    %c0_11 = arith.constant 0 : index
    %14 = vector.load %arg11[%c0_9, %c0_10, %c0_11] : memref<1x9x64xbf16, #tpu.memory_space<vmem>>, vector<1x2x64xbf16>
    tpu.vector_store %arg11[%c0_9, %c0_10, %c0_11], %13 {strides = array<i32>} : memref<1x9x64xbf16, #tpu.memory_space<vmem>>, vector<1x2x64xbf16>,
    %c0_12 = arith.constant 0 : index
    %c2 = arith.constant 2 : index
    %c0_13 = arith.constant 0 : index
    %15 = vector.load %arg11[%c0_12, %c2, %c0_13] : memref<1x9x64xbf16, #tpu.memory_space<vmem>>, vector<1x4x64xbf16>
    tpu.vector_store %arg11[%c0_12, %c2, %c0_13], %12 {strides = array<i32>} : memref<1x9x64xbf16, #tpu.memory_space<vmem>>, vector<1x4x64xbf16>,
    %cst_14 = arith.constant 0.000000e+00 : bf16
    %16 = vector.broadcast %cst_14 : bf16 to vector<1x3x64xbf16>
    %c0_15 = arith.constant 0 : index
    %c6 = arith.constant 6 : index
    %c0_16 = arith.constant 0 : index
    %17 = vector.load %arg11[%c0_15, %c6, %c0_16] : memref<1x9x64xbf16, #tpu.memory_space<vmem>>, vector<1x3x64xbf16>
    tpu.vector_store %arg11[%c0_15, %c6, %c0_16], %16 {strides = array<i32>} : memref<1x9x64xbf16, #tpu.memory_space<vmem>>, vector<1x3x64xbf16>,
    %c0_17 = arith.constant 0 : index
    %c0_18 = arith.constant 0 : index
    %c0_19 = arith.constant 0 : index
    %18 = vector.load %arg11[%c0_17, %c0_18, %c0_19] : memref<1x9x64xbf16, #tpu.memory_space<vmem>>, vector<1x4x64xbf16>
    %c0_20 = arith.constant 0 : index
    %c1 = arith.constant 1 : index
    %c0_21 = arith.constant 0 : index
    %19 = vector.load %arg11[%c0_20, %c1, %c0_21] : memref<1x9x64xbf16, #tpu.memory_space<vmem>>, vector<1x4x64xbf16>
    %c0_22 = arith.constant 0 : index
    %c2_23 = arith.constant 2 : index
    %c0_24 = arith.constant 0 : index
    %20 = vector.load %arg11[%c0_22, %c2_23, %c0_24] : memref<1x9x64xbf16, #tpu.memory_space<vmem>>, vector<1x4x64xbf16>
    %c0_25 = arith.constant 0 : index
    %c3 = arith.constant 3 : index
    %c0_26 = arith.constant 0 : index
    %21 = vector.load %arg11[%c0_25, %c3, %c0_26] : memref<1x9x64xbf16, #tpu.memory_space<vmem>>, vector<1x4x64xbf16>
    %c0_27 = arith.constant 0 : index
    %c4 = arith.constant 4 : index
    %c0_28 = arith.constant 0 : index
    %22 = vector.load %arg11[%c0_27, %c4, %c0_28] : memref<1x9x64xbf16, #tpu.memory_space<vmem>>, vector<1x4x64xbf16>
    %c0_29 = arith.constant 0 : index
    %c5 = arith.constant 5 : index
    %c0_30 = arith.constant 0 : index
    %23 = vector.load %arg11[%c0_29, %c5, %c0_30] : memref<1x9x64xbf16, #tpu.memory_space<vmem>>, vector<1x4x64xbf16>
    %24 = tpu.concatenate %18, %19, %20, %21, %22, %23 in 2 : vector<1x4x64xbf16>, vector<1x4x64xbf16>, vector<1x4x64xbf16>, vector<1x4x64xbf16>, vector<1x4x64xbf16>, vector<1x4x64xbf16> -> vector<1x4x384xbf16>
    %25 = vector.shape_cast %24 : vector<1x4x384xbf16> to vector<4x384xbf16>
    %c0_31 = arith.constant 0 : index
    %c0_32 = arith.constant 0 : index
    %26 = vector.load %arg4[%c0_31, %c0_32] : memref<384x128xbf16, #tpu.memory_space<vmem>>, vector<384x128xbf16>
    %cst_33 = arith.constant dense<0.000000e+00> : vector<4x128xf32>
    %27 = tpu.matmul %25, %26, %cst_33 {dimension_numbers = #tpu.dot_dimension_numbers<[1], [0], [0], [1], [0, 0, 1, 1], [], []>} : vector<4x384xbf16>, vector<384x128xbf16>, vector<4x128xf32> -> vector<4x128xf32>
    %c0_34 = arith.constant 0 : index
    %c0_35 = arith.constant 0 : index
    %28 = vector.load %arg5[%c0_34, %c0_35] : memref<1x128xf32, #tpu.memory_space<vmem>>, vector<1x128xf32>
    %29 = vector.broadcast %28 : vector<1x128xf32> to vector<4x128xf32>
    %30 = arith.addf %27, %29 : vector<4x128xf32>
    %cst_36 = arith.constant 0.000000e+00 : f32
    %31 = vector.broadcast %cst_36 : f32 to vector<4x128xf32>
    %32 = arith.maximumf %30, %31 : vector<4x128xf32>
    %33 = vector.shape_cast %32 : vector<4x128xf32> to vector<1x4x128xf32>
    %34 = arith.truncf %33 : vector<1x4x128xf32> to vector<1x4x128xbf16>
    %cst_37 = arith.constant 0.000000e+00 : bf16
    %35 = vector.broadcast %cst_37 : bf16 to vector<1x2x128xbf16>
    %c0_38 = arith.constant 0 : index
    %c0_39 = arith.constant 0 : index
    %c0_40 = arith.constant 0 : index
    %36 = vector.load %arg12[%c0_38, %c0_39, %c0_40] : memref<1x9x128xbf16, #tpu.memory_space<vmem>>, vector<1x2x128xbf16>
    tpu.vector_store %arg12[%c0_38, %c0_39, %c0_40], %35 {strides = array<i32>} : memref<1x9x128xbf16, #tpu.memory_space<vmem>>, vector<1x2x128xbf16>,
    %c0_41 = arith.constant 0 : index
    %c2_42 = arith.constant 2 : index
    %c0_43 = arith.constant 0 : index
    %37 = vector.load %arg12[%c0_41, %c2_42, %c0_43] : memref<1x9x128xbf16, #tpu.memory_space<vmem>>, vector<1x4x128xbf16>
    tpu.vector_store %arg12[%c0_41, %c2_42, %c0_43], %34 {strides = array<i32>} : memref<1x9x128xbf16, #tpu.memory_space<vmem>>, vector<1x4x128xbf16>,
    %cst_44 = arith.constant 0.000000e+00 : bf16
    %38 = vector.broadcast %cst_44 : bf16 to vector<1x3x128xbf16>
    %c0_45 = arith.constant 0 : index
    %c6_46 = arith.constant 6 : index
    %c0_47 = arith.constant 0 : index
    %39 = vector.load %arg12[%c0_45, %c6_46, %c0_47] : memref<1x9x128xbf16, #tpu.memory_space<vmem>>, vector<1x3x128xbf16>
    tpu.vector_store %arg12[%c0_45, %c6_46, %c0_47], %38 {strides = array<i32>} : memref<1x9x128xbf16, #tpu.memory_space<vmem>>, vector<1x3x128xbf16>,
    %c0_48 = arith.constant 0 : index
    %c0_49 = arith.constant 0 : index
    %c0_50 = arith.constant 0 : index
    %40 = vector.load %arg12[%c0_48, %c0_49, %c0_50] : memref<1x9x128xbf16, #tpu.memory_space<vmem>>, vector<1x4x128xbf16>
    %c0_51 = arith.constant 0 : index
    %c1_52 = arith.constant 1 : index
    %c0_53 = arith.constant 0 : index
    %41 = vector.load %arg12[%c0_51, %c1_52, %c0_53] : memref<1x9x128xbf16, #tpu.memory_space<vmem>>, vector<1x4x128xbf16>
    %c0_54 = arith.constant 0 : index
    %c2_55 = arith.constant 2 : index
    %c0_56 = arith.constant 0 : index
    %42 = vector.load %arg12[%c0_54, %c2_55, %c0_56] : memref<1x9x128xbf16, #tpu.memory_space<vmem>>, vector<1x4x128xbf16>
    %c0_57 = arith.constant 0 : index
    %c3_58 = arith.constant 3 : index
    %c0_59 = arith.constant 0 : index
    %43 = vector.load %arg12[%c0_57, %c3_58, %c0_59] : memref<1x9x128xbf16, #tpu.memory_space<vmem>>, vector<1x4x128xbf16>
    %c0_60 = arith.constant 0 : index
    %c4_61 = arith.constant 4 : index
    %c0_62 = arith.constant 0 : index
    %44 = vector.load %arg12[%c0_60, %c4_61, %c0_62] : memref<1x9x128xbf16, #tpu.memory_space<vmem>>, vector<1x4x128xbf16>
    %c0_63 = arith.constant 0 : index
    %c5_64 = arith.constant 5 : index
    %c0_65 = arith.constant 0 : index
    %45 = vector.load %arg12[%c0_63, %c5_64, %c0_65] : memref<1x9x128xbf16, #tpu.memory_space<vmem>>, vector<1x4x128xbf16>
    %46 = tpu.concatenate %40, %41, %42, %43, %44, %45 in 2 : vector<1x4x128xbf16>, vector<1x4x128xbf16>, vector<1x4x128xbf16>, vector<1x4x128xbf16>, vector<1x4x128xbf16>, vector<1x4x128xbf16> -> vector<1x4x768xbf16>
    %47 = vector.shape_cast %46 : vector<1x4x768xbf16> to vector<4x768xbf16>
    %c0_66 = arith.constant 0 : index
    %c0_67 = arith.constant 0 : index
    %48 = vector.load %arg6[%c0_66, %c0_67] : memref<768x128xbf16, #tpu.memory_space<vmem>>, vector<768x128xbf16>
    %cst_68 = arith.constant dense<0.000000e+00> : vector<4x128xf32>
    %49 = tpu.matmul %47, %48, %cst_68 {dimension_numbers = #tpu.dot_dimension_numbers<[1], [0], [0], [1], [0, 0, 1, 1], [], []>} : vector<4x768xbf16>, vector<768x128xbf16>, vector<4x128xf32> -> vector<4x128xf32>
    %c0_69 = arith.constant 0 : index
    %c0_70 = arith.constant 0 : index
    %50 = vector.load %arg7[%c0_69, %c0_70] : memref<1x128xf32, #tpu.memory_space<vmem>>, vector<1x128xf32>
    %51 = vector.broadcast %50 : vector<1x128xf32> to vector<4x128xf32>
    %52 = arith.addf %49, %51 : vector<4x128xf32>
    %cst_71 = arith.constant 0.000000e+00 : f32
    %53 = vector.broadcast %cst_71 : f32 to vector<4x128xf32>
    %54 = arith.maximumf %52, %53 : vector<4x128xf32>
    %55 = vector.shape_cast %54 : vector<4x128xf32> to vector<1x4x128xf32>
    %56 = arith.truncf %55 : vector<1x4x128xf32> to vector<1x4x128xbf16>
    %cst_72 = arith.constant 0.000000e+00 : bf16
    %57 = vector.broadcast %cst_72 : bf16 to vector<1x2x128xbf16>
    %c0_73 = arith.constant 0 : index
    %c0_74 = arith.constant 0 : index
    %c0_75 = arith.constant 0 : index
    %58 = vector.load %arg12[%c0_73, %c0_74, %c0_75] : memref<1x9x128xbf16, #tpu.memory_space<vmem>>, vector<1x2x128xbf16>
    tpu.vector_store %arg12[%c0_73, %c0_74, %c0_75], %57 {strides = array<i32>} : memref<1x9x128xbf16, #tpu.memory_space<vmem>>, vector<1x2x128xbf16>,
    %c0_76 = arith.constant 0 : index
    %c2_77 = arith.constant 2 : index
    %c0_78 = arith.constant 0 : index
    %59 = vector.load %arg12[%c0_76, %c2_77, %c0_78] : memref<1x9x128xbf16, #tpu.memory_space<vmem>>, vector<1x4x128xbf16>
    tpu.vector_store %arg12[%c0_76, %c2_77, %c0_78], %56 {strides = array<i32>} : memref<1x9x128xbf16, #tpu.memory_space<vmem>>, vector<1x4x128xbf16>,
    %cst_79 = arith.constant 0.000000e+00 : bf16
    %60 = vector.broadcast %cst_79 : bf16 to vector<1x3x128xbf16>
    %c0_80 = arith.constant 0 : index
    %c6_81 = arith.constant 6 : index
    %c0_82 = arith.constant 0 : index
    %61 = vector.load %arg12[%c0_80, %c6_81, %c0_82] : memref<1x9x128xbf16, #tpu.memory_space<vmem>>, vector<1x3x128xbf16>
    tpu.vector_store %arg12[%c0_80, %c6_81, %c0_82], %60 {strides = array<i32>} : memref<1x9x128xbf16, #tpu.memory_space<vmem>>, vector<1x3x128xbf16>,
    %c0_83 = arith.constant 0 : index
    %c0_84 = arith.constant 0 : index
    %c0_85 = arith.constant 0 : index
    %62 = vector.load %arg12[%c0_83, %c0_84, %c0_85] : memref<1x9x128xbf16, #tpu.memory_space<vmem>>, vector<1x4x128xbf16>
    %c0_86 = arith.constant 0 : index
    %c1_87 = arith.constant 1 : index
    %c0_88 = arith.constant 0 : index
    %63 = vector.load %arg12[%c0_86, %c1_87, %c0_88] : memref<1x9x128xbf16, #tpu.memory_space<vmem>>, vector<1x4x128xbf16>
    %c0_89 = arith.constant 0 : index
    %c2_90 = arith.constant 2 : index
    %c0_91 = arith.constant 0 : index
    %64 = vector.load %arg12[%c0_89, %c2_90, %c0_91] : memref<1x9x128xbf16, #tpu.memory_space<vmem>>, vector<1x4x128xbf16>
    %c0_92 = arith.constant 0 : index
    %c3_93 = arith.constant 3 : index
    %c0_94 = arith.constant 0 : index
    %65 = vector.load %arg12[%c0_92, %c3_93, %c0_94] : memref<1x9x128xbf16, #tpu.memory_space<vmem>>, vector<1x4x128xbf16>
    %c0_95 = arith.constant 0 : index
    %c4_96 = arith.constant 4 : index
    %c0_97 = arith.constant 0 : index
    %66 = vector.load %arg12[%c0_95, %c4_96, %c0_97] : memref<1x9x128xbf16, #tpu.memory_space<vmem>>, vector<1x4x128xbf16>
    %c0_98 = arith.constant 0 : index
    %c5_99 = arith.constant 5 : index
    %c0_100 = arith.constant 0 : index
    %67 = vector.load %arg12[%c0_98, %c5_99, %c0_100] : memref<1x9x128xbf16, #tpu.memory_space<vmem>>, vector<1x4x128xbf16>
    %68 = tpu.concatenate %62, %63, %64, %65, %66, %67 in 2 : vector<1x4x128xbf16>, vector<1x4x128xbf16>, vector<1x4x128xbf16>, vector<1x4x128xbf16>, vector<1x4x128xbf16>, vector<1x4x128xbf16> -> vector<1x4x768xbf16>
    %69 = vector.shape_cast %68 : vector<1x4x768xbf16> to vector<4x768xbf16>
    %c0_101 = arith.constant 0 : index
    %c0_102 = arith.constant 0 : index
    %70 = vector.load %arg8[%c0_101, %c0_102] : memref<768x128xbf16, #tpu.memory_space<vmem>>, vector<768x128xbf16>
    %cst_103 = arith.constant dense<0.000000e+00> : vector<4x128xf32>
    %71 = tpu.matmul %69, %70, %cst_103 {dimension_numbers = #tpu.dot_dimension_numbers<[1], [0], [0], [1], [0, 0, 1, 1], [], []>} : vector<4x768xbf16>, vector<768x128xbf16>, vector<4x128xf32> -> vector<4x128xf32>
    %c0_104 = arith.constant 0 : index
    %c0_105 = arith.constant 0 : index
    %72 = vector.load %arg9[%c0_104, %c0_105] : memref<1x128xf32, #tpu.memory_space<vmem>>, vector<1x128xf32>
    %73 = vector.broadcast %72 : vector<1x128xf32> to vector<4x128xf32>
    %74 = arith.addf %71, %73 : vector<4x128xf32>
    %cst_106 = arith.constant 0.000000e+00 : f32
    %75 = vector.broadcast %cst_106 : f32 to vector<4x128xf32>
    %76 = arith.maximumf %74, %75 : vector<4x128xf32>
    %77 = vector.shape_cast %76 : vector<4x128xf32> to vector<1x4x128xf32>
    %78 = arith.truncf %77 : vector<1x4x128xf32> to vector<1x4x128xbf16>
    %cst_107 = arith.constant 0.000000e+00 : bf16
    %79 = vector.broadcast %cst_107 : bf16 to vector<1x1x128xbf16>
    %80 = tpu.concatenate %79, %78, %79 in 1 : vector<1x1x128xbf16>, vector<1x4x128xbf16>, vector<1x1x128xbf16> -> vector<1x6x128xbf16>
    %81 = vector.shape_cast %80 : vector<1x6x128xbf16> to vector<1x3x2x128xbf16>
    %cst_108 = arith.constant dense<0xFF80> : vector<1x3x128xbf16>
    %82 = vector.multi_reduction <maximumf>, %81, %cst_108 [2] : vector<1x3x2x128xbf16> to vector<1x3x128xbf16>
    %83 = arith.extf %82 : vector<1x3x128xbf16> to vector<1x3x128xf32>
    %c0_109 = arith.constant 0 : index
    %c0_110 = arith.constant 0 : index
    %c0_111 = arith.constant 0 : index
    %84 = vector.load %arg10[%c0_109, %c0_110, %c0_111] : memref<1x3x128xf32, #tpu.memory_space<vmem>>, vector<1x3x128xf32>
    tpu.vector_store %arg10[%c0_109, %c0_110, %c0_111], %83 {strides = array<i32>} : memref<1x3x128xf32, #tpu.memory_space<vmem>>, vector<1x3x128xf32>,
    return
  }
  func.func @transform_0(%arg0: i32) -> (i32, i32, i32) {
    %c0_i32 = arith.constant 0 : i32
    %c0_i32_0 = arith.constant 0 : i32
    %c0_i32_1 = arith.constant 0 : i32
    return %arg0, %c0_i32, %c0_i32_0 : i32, i32, i32
  }
  func.func @transform_1(%arg0: i32) -> (i32, i32) {
    %c0_i32 = arith.constant 0 : i32
    %c0_i32_0 = arith.constant 0 : i32
    %c0_i32_1 = arith.constant 0 : i32
    return %c0_i32, %c0_i32_0 : i32, i32
  }
  func.func @transform_2(%arg0: i32) -> (i32, i32) {
    %c0_i32 = arith.constant 0 : i32
    %c0_i32_0 = arith.constant 0 : i32
    %c0_i32_1 = arith.constant 0 : i32
    return %c0_i32, %c0_i32_0 : i32, i32
  }
  func.func @transform_3(%arg0: i32) -> (i32, i32) {
    %c0_i32 = arith.constant 0 : i32
    %c0_i32_0 = arith.constant 0 : i32
    %c0_i32_1 = arith.constant 0 : i32
    return %c0_i32, %c0_i32_0 : i32, i32
  }
  func.func @transform_4(%arg0: i32) -> (i32, i32) {
    %c0_i32 = arith.constant 0 : i32
    %c0_i32_0 = arith.constant 0 : i32
    %c0_i32_1 = arith.constant 0 : i32
    return %c0_i32, %c0_i32_0 : i32, i32
  }
  func.func @transform_5(%arg0: i32) -> (i32, i32) {
    %c0_i32 = arith.constant 0 : i32
    %c0_i32_0 = arith.constant 0 : i32
    %c0_i32_1 = arith.constant 0 : i32
    return %c0_i32, %c0_i32_0 : i32, i32
  }
  func.func @transform_6(%arg0: i32) -> (i32, i32) {
    %c0_i32 = arith.constant 0 : i32
    %c0_i32_0 = arith.constant 0 : i32
    %c0_i32_1 = arith.constant 0 : i32
    return %c0_i32, %c0_i32_0 : i32, i32
  }
  func.func @transform_7(%arg0: i32) -> (i32, i32) {
    %c0_i32 = arith.constant 0 : i32
    %c0_i32_0 = arith.constant 0 : i32
    %c0_i32_1 = arith.constant 0 : i32
    return %c0_i32, %c0_i32_0 : i32, i32
  }
  func.func @transform_8(%arg0: i32) -> (i32, i32) {
    %c0_i32 = arith.constant 0 : i32
    %c0_i32_0 = arith.constant 0 : i32
    %c0_i32_1 = arith.constant 0 : i32
    return %c0_i32, %c0_i32_0 : i32, i32
  }
  func.func @transform_9(%arg0: i32) -> (i32, i32, i32) {
    %c0_i32 = arith.constant 0 : i32
    %c0_i32_0 = arith.constant 0 : i32
    %c0_i32_1 = arith.constant 0 : i32
    return %arg0, %c0_i32, %c0_i32_0 : i32, i32, i32
  }
}

</mosaic_0001>

<bundles_post_ra>
// kernel: large_cnn_forward.1
= control target key start
LH: loop header
LB: loop body
LE: loop exit
PB: predicated region body
PF: predicated region fallthrough
CT: control target
= control target key end

     0   :  { %14 = vsyncpa [#allocation5], 0  ;;  %s3079_s30 = smov 0   ;;  %s3541_s0 = inlined_call_operand.vmem [shape: bf16[2,16,400], index: 0, kind: input, shape index: {}]   ;;  %s3542_s1 = inlined_call_operand.vmem [shape: bf16[400,64], index: 1, kind: input, shape index: {}]   ;;  %s3543_s2 = inlined_call_operand.vmem [shape: f32[1,64], index: 2, kind: input, shape index: {}]   ;;  %s3544_s3 = inlined_call_operand.hbm [shape: bf16[384,128], index: 3, kind: input, shape index: {}]   ;;  %s3545_s4 = inlined_call_operand.vmem [shape: f32[1,128], index: 4, kind: input, shape index: {}]   ;;  %s3546_s5 = inlined_call_operand.vmem [shape: bf16[768,128], index: 5, kind: input, shape index: {}]   ;;  %s3547_s6 = inlined_call_operand.vmem [shape: f32[1,128], index: 6, kind: input, shape index: {}]   ;;  %s3548_s7 = inlined_call_operand.vmem [shape: bf16[768,128], index: 7, kind: input, shape index: {}]   ;;  %s3549_s8 = inlined_call_operand.vmem [shape: f32[1,128], index: 8, kind: input, shape index: {}]   ;;  %s3550_s9 = inlined_call_operand.vmem [shape: f32[2,3,128], index: 9, kind: output, shape index: {}]  }
   0x1 LB: > { %s3085_s10 = sadd.s32 4294967295, %s3019_s30   ;;  %p2396_p0 = scmp.ge.s32.totalorder %s3019_s30, 1  ;;  %s3019_s30 = sphi %s3079_s30, %s20_s30  }
   0x2   : > { %p245_p1 = scmp.lt.s32.totalorder %s3019_s30, 3  ;;  %s3021_s11 = smov [#allocation4]  }
   0x3   : > { %s263_s12 = sshll.u32 %s3021_s11, 4  ;;  %p2801_p3 = scmp.eq.s32.totalorder %s3085_s10, 0  ;;  %s264_s12 = int_to_ptr.vmem [resolvable:$true] %s263_s12 }
   0x4   : > { %p3089_p2 = pnand %p2396_p0, %p245_p1  ;;  %s2994_s14 = scalar_lea.vmem %s264_s12, 3072 }
   0x5   : > { %p2995_p7 = scmp.ne.s32.totalorder %s264_s12, %s2994_s14  ;;  %p3002_p10 = scmp.lt.s32.totalorder %s264_s12, %s264_s12 }
   0x6   : > { %p2797_p4 = pneg %p3089_p2  ;;  %p3003_p11 = scmp.lt.s32.totalorder %s2994_s14, %s2994_s14 }
   0x8   : > { %p2798_p5 = pnand %p2801_p3, %p2797_p4  ;;  %p3004_p12 = por %p3003_p11, %p3002_p10 }
   0xa   : > { %p2985_p6 = pneg %p2798_p5 }
   0xc   : > { %p2997_p8 = pnand %p2995_p7, %p2985_p6 }
   0xe   : > { %p2998_p9 = pneg %p2997_p8 }
  0x10   : > { %p3005_p13 = pnand %p3004_p12, %p2998_p9 }
  0x12   : > { %3008 = shalt.err (!%p3005_p13)
}
  0x13   : > { %s3022_s15 = smov 64   ;;  %s3023_s16 = smov 4  }
  0x14   : > { %2800 = dma.hbm_to_vmem [thread:$0]  (!%p2798_p5), %s3544_s3, 3072, %s264_s12, [#allocation5], %s3022_s15, %s3022_s15, %s3023_s16  }
  0x15   : > { %302 = sbr.rel (%p3089_p2) target bundleno = 1149 (0x47d), region = 56 }
  0x1a   : > { %3014 = dma.done.wait (%p2801_p3), [#allocation5], 3072  }
  0x1b   : > { %3016 = vsyncadd (%p2801_p3), [#allocation5], 4294964224  ;;  %v3024_v0 = vmov 0   ;;  %v2819_v1 = vld [vmem:[%s3542_s1 + $0x78] sm:$0xff]   ;;  %v2822_v4 = vld [vmem:[%s3542_s1 + $0x70] sm:$0xff]   ;;  %p337_p0 = scmp.lt.s32.totalorder %s3085_s10, 1 }
  0x1c   : > { %623 = vmatprep.subr.bf16.mxu1 %v3024_v0  ;;  %1087 = vst [vmem:[#allocation3] sm:$0x1] %v3024_v0  ;;  %1094 = vst [vmem:[#allocation3] sm:$0x8] %v3024_v0  ;;  %v2820_v2 = vld [vmem:[%s3542_s1 + $0xb8] sm:$0xff]   ;;  %2588 = vmatprep.subr.bf16.mxu0 %v2819_v1  ;;  %v2823_v5 = vld [vmem:[%s3542_s1 + $0xb0] sm:$0xff]  }
  0x1d   : > { %v2821_v3 = vld [vmem:[%s3542_s1 + $0x38] sm:$0xff]   ;;  %624 = vmatpush1.bf16.msra.mxu1 %v2820_v2  ;;  %v2824_v6 = vld [vmem:[%s3542_s1 + $0x30] sm:$0xff]   ;;  %v2825_v7 = vld [vmem:[%s3542_s1 + $0x68] sm:$0xff]   ;;  %s3555_s10 = smov (!%p337_p0, %s3085_s10), 1  ;;  %vm578_vm0 = vcmask 130048   ;;  %vm705_vm1 = vcmask 516096  }
  0x1e   : > { %2589 = vmatpush3.bf16.msra.mxu0 %v2821_v3  ;;  %625 = vmatprep.subr.bf16.mxu1 %v3024_v0  ;;  %v2826_v8 = vld [vmem:[%s3542_s1 + $0xa8] sm:$0xff]   ;;  %v2828_v10 = vld [vmem:[%s3542_s1 + $0x60] sm:$0xff]   ;;  %v2831_v13 = vld [vmem:[%s3542_s1 + $0x58] sm:$0xff]   ;;  %s2581_s15 = sshll.u32 %s3555_s10, 5  ;;  %vm736_vm2 = vsmask.f32 256 }
  0x1f   : > { %2590 = vmatprep.subr.bf16.mxu0 %v2822_v4  ;;  %v2827_v9 = vld [vmem:[%s3542_s1 + $0x28] sm:$0xff]   ;;  %v2829_v11 = vld [vmem:[%s3542_s1 + $0xa0] sm:$0xff]   ;;  %v2832_v14 = vld [vmem:[%s3542_s1 + $0x98] sm:$0xff]   ;;  %s341_s24 = scalar_lea.vmem %s3541_s0, %s2581_s15  ;;  %706 = vst.msk [vmem:[#allocation2] sm:$0x1] %vm705_vm1, %v3024_v0  ;;  %vm733_vm4 = vcmask 519171  }
  0x20   : > { %v2830_v12 = vld [vmem:[%s3542_s1 + $0x20] sm:$0xff]   ;;  %v2833_v15 = vld [vmem:[%s3542_s1 + $0x18] sm:$0xff]   ;;  %v2834_v16 = vld [vmem:[%s3542_s1 + $0x50] sm:$0xff]   ;;  %734 = vst.msk [vmem:[#allocation2] sm:$0x8] %vm733_vm4, %v3024_v0  ;;  %v3025_v35 = vmov 0.0  }
  0x21   : > { %626 = vmatpush1.bf16.msra.mxu1 %v2823_v5  ;;  %v2835_v17 = vld [vmem:[%s3542_s1 + $0x90] sm:$0xff]   ;;  %v2837_v19 = vld [vmem:[%s3542_s1 + $0x48] sm:$0xff]   ;;  %v2840_v22 = vld [vmem:[%s3542_s1 + $0x40] sm:$0xff]   ;;  %vm672_vm5 = vcmask 519168   ;;  %vm723_vm6 = vcmask 1043459   ;;  %vm725_vm7 = vcmask 1044484  }
  0x22   : > { %2591 = vmatpush3.bf16.msra.mxu0 %v2824_v6  ;;  %627 = vmatprep.subr.bf16.mxu1 %v3024_v0  ;;  %v2836_v18 = vld [vmem:[%s3542_s1 + $0x10] sm:$0xff]   ;;  %v2838_v20 = vld [vmem:[%s3542_s1 + $0x88] sm:$0xff]   ;;  %v2841_v24 = vld [vmem:[%s3542_s1 + $0x80] sm:$0xff]   ;;  %vm727_vm8 = vcmask 1045509   ;;  %vm731_vm9 = vcmask 518145   ;;  %vm3026_vm10 = vmmov 0  }
  0x23   : > { %2592 = vmatprep.subr.bf16.mxu0 %v2825_v7  ;;  %v2839_v21 = vld [vmem:[%s3542_s1 + $0x8] sm:$0xff]   ;;  %v2845_v23 = vld [vmem:[%s341_s24 + $0x4] ss:$16 sps:$4 sm:$0xff]   ;;  %v2843_v27 = vld [vmem:[%s341_s24] ss:$16 sps:$4 sm:$0xff]   ;;  %s3027_s18 = smov 64  }
  0x24   : > { %v2842_v25 = vld [vmem:[%s3542_s1] sm:$0xff]   ;;  %614 = vmatprep.mubr.bf16.mxu0 %v2845_v23  ;;  %v2849_v26 = vld [vmem:[%s341_s24 + $0xc] ss:$16 sps:$4 sm:$0xff]   ;;  %v2847_v29 = vld [vmem:[%s341_s24 + $0x8] ss:$16 sps:$4 sm:$0xff]   ;;  %vm793_vm11 = vcmask 523264  }
  0x25   : > { %628 = vmatpush1.bf16.msra.mxu1 %v2826_v8  ;;  %v2846_v28 = vld [vmem:[%s3542_s1 + $0xc0] sm:$0xff]   ;;  %2434 = vmatprep.mubr.msk.bf16.mxu1 %vm578_vm0, %v2849_v26  ;;  %vm737_vm3 = vmand %vm705_vm1, %vm736_vm2  ;;  %v2853_v32 = vld [vmem:[#allocation4 + $0xb8] sm:$0xff]   ;;  %vm1095_vm12 = vcmask 1040384   ;;  %vm2248_vm14 = vcmask 1042432   ;;  %vm2249_vm15 = vsmask.f32 2304 }
  0x26   : > { %2593 = vmatpush3.bf16.msra.mxu0 %v2827_v9  ;;  %629 = vmatprep.subr.bf16.mxu1 %v3024_v0  ;;  %v738_v30 = vld [vmem:[#allocation2 + $0x4] sm:$0x1]  ;;  %v2854_v33 = vld [vmem:[#allocation4 + $0x78] sm:$0xff]   ;;  %v2860_v39 = vld [vmem:[#allocation4 + $0x68] sm:$0xff]   ;;  %s2403_s27 = sshll.u32 %s3555_s10, 2  ;;  %vm2323_vm1 = vcmask 1041409  }
  0x27   : > { %2594 = vmatprep.subr.bf16.mxu0 %v2828_v10  ;;  %v739_v31 = vsel %vm737_vm3, 0, %v738_v30  ;;  %v2855_v34 = vld [vmem:[#allocation4 + $0x38] sm:$0xff]   ;;  %v2857_v36 = vld [vmem:[#allocation4 + $0x70] sm:$0xff]   ;;  %v2859_v40 = vld [vmem:[#allocation4 + $0xa8] sm:$0xff]   ;;  %s345_s11 = scalar_lea.vmem %s3550_s9, %s2403_s27 }
  0x28   : > { %740 = vst [vmem:[#allocation2 + $0x4] sm:$0x1] %v739_v31  ;;  %v2856_v37 = vld [vmem:[#allocation4 + $0xb0] sm:$0xff]   ;;  %v2861_v41 = vld [vmem:[#allocation4 + $0x28] sm:$0xff]   ;;  %v2863_v42 = vld [vmem:[#allocation4 + $0x60] sm:$0xff]  }
  0x29   : > { %630 = vmatpush1.bf16.msra.mxu1 %v2829_v11  ;;  %v2858_v38 = vld [vmem:[#allocation4 + $0x30] sm:$0xff]   ;;  %v2862_v43 = vld [vmem:[#allocation4 + $0xa0] sm:$0xff]   ;;  %v2866_v45 = vld [vmem:[#allocation4 + $0x58] sm:$0xff]  }
  0x2a   : > { %2595 = vmatpush3.bf16.msra.mxu0 %v2830_v12  ;;  %631 = vmatprep.subr.bf16.mxu1 %v3024_v0  ;;  %v2864_v44 = vld [vmem:[#allocation4 + $0x20] sm:$0xff]   ;;  %v2865_v46 = vld [vmem:[#allocation4 + $0x98] sm:$0xff]   ;;  %v2869_v48 = vld [vmem:[#allocation4 + $0x50] sm:$0xff]  }
  0x2b   : > { %2596 = vmatprep.subr.bf16.mxu0 %v2831_v13  ;;  %v2867_v47 = vld [vmem:[#allocation4 + $0x18] sm:$0xff]   ;;  %v2868_v49 = vld [vmem:[#allocation4 + $0x90] sm:$0xff]   ;;  %v2872_v51 = vld [vmem:[#allocation4 + $0x48] sm:$0xff]  }
  0x2c   : > { %v2870_v50 = vld [vmem:[#allocation4 + $0x10] sm:$0xff]   ;;  %v2871_v52 = vld [vmem:[#allocation4 + $0x88] sm:$0xff]   ;;  %v2874_v54 = vld [vmem:[#allocation4 + $0x80] sm:$0xff]  }
  0x2d   : > { %632 = vmatpush1.bf16.msra.mxu1 %v2832_v14  ;;  %v2873_v53 = vld [vmem:[#allocation4 + $0x8] sm:$0xff]   ;;  %v2404_v57 = vld [vmem:[%s3543_s2] ss:$0 sm:$0xff]  ;;  %vm3300_vm13 = vmand %vm1095_vm12, %vm736_vm2  ;;  %vm2325_vm2 = vcmask 1042434  }
  0x2e   : > { %2597 = vmatpush3.bf16.msra.mxu0 %v2833_v15  ;;  %633 = vmatprep.subr.bf16.mxu1 %v3024_v0  ;;  %vm2250_vm0 = vmand %vm2248_vm14, %vm2249_vm15 }
  0x2f   : > { %2598 = vmatprep.subr.bf16.mxu0 %v2834_v16 }
  0x31   : > { %634 = vmatpush1.bf16.msra.mxu1 %v2835_v17 }
  0x32   : > { %2599 = vmatpush3.bf16.msra.mxu0 %v2836_v18  ;;  %635 = vmatprep.subr.bf16.mxu1 %v3024_v0 }
  0x33   : > { %2600 = vmatprep.subr.bf16.mxu0 %v2837_v19 }
  0x35   : > { %636 = vmatpush1.bf16.msra.mxu1 %v2838_v20 }
  0x36   : > { %2601 = vmatpush3.bf16.msra.mxu0 %v2839_v21  ;;  %637 = vmatprep.subr.bf16.mxu1 %v3024_v0 }
  0x37   : > { %2602 = vmatprep.subr.bf16.mxu0 %v2840_v22 }
  0x39   : > { %638 = vmatpush1.bf16.msra.mxu1 %v2841_v24 }
  0x3a   : > { %2603 = vmatpush3.bf16.msra.mxu0 %v2842_v25  ;;  %653 = vmatprep.subr.bf16.mxu1 %v3024_v0 }
  0x3b   : > { %2610 = vmatprep.subr.bf16.mxu0 %v2854_v33 }
  0x3d   : > { %615 = vmatmul.mubr.bf16.vlgmr.msra.gmra.mxu0 %v2843_v27  ;;  %654 = vmatpush2.bf16.msra.mxu1 %v2846_v28 }
  0x3e   : > { %2773 = vmatprep.subr.bf16.mxu1 %v3025_v35  ;;  %2611 = vmatpush3.bf16.msra.mxu0 %v2855_v34 }
  0x3f   : > { %2612 = vmatprep.subr.bf16.mxu0 %v2857_v36 }
  0x40   : > { %656 = vmatmul.mubr.bf16.vlgmr.msra.gmra.mxu1 %v2847_v29 }
  0x41   : > { %2774 = vmatpush3.bf16.msra.mxu1 %v2853_v32  ;;  %2789 = vmatprep.mubr.msk.bf16.mxu1 %vm3026_vm10, %v3025_v35 }
  0x42   : > { %2775 = vmatprep.subr.bf16.mxu1 %v3025_v35  ;;  %2613 = vmatpush3.bf16.msra.mxu0 %v2858_v38 }
  0x43   : > { %2614 = vmatprep.subr.bf16.mxu0 %v2860_v39 }
  0x45   : > { %2776 = vmatpush3.bf16.msra.mxu1 %v2856_v37 }
  0x46   : > { %2777 = vmatprep.subr.bf16.mxu1 %v3025_v35  ;;  %2615 = vmatpush3.bf16.msra.mxu0 %v2861_v41 }
  0x47   : > { %2616 = vmatprep.subr.bf16.mxu0 %v2863_v42 }
  0x49   : > { %2778 = vmatpush3.bf16.msra.mxu1 %v2859_v40 }
  0x4a   : > { %2779 = vmatprep.subr.bf16.mxu1 %v3025_v35  ;;  %2617 = vmatpush3.bf16.msra.mxu0 %v2864_v44 }
  0x4b   : > { %2618 = vmatprep.subr.bf16.mxu0 %v2866_v45 }
  0x4d   : > { %2780 = vmatpush3.bf16.msra.mxu1 %v2862_v43 }
  0x4e   : > { %2781 = vmatprep.subr.bf16.mxu1 %v3025_v35  ;;  %2619 = vmatpush3.bf16.msra.mxu0 %v2867_v47 }
  0x4f   : > { %2620 = vmatprep.subr.bf16.mxu0 %v2869_v48 }
  0x51   : > { %2782 = vmatpush3.bf16.msra.mxu1 %v2865_v46 }
  0x52   : > { %2783 = vmatprep.subr.bf16.mxu1 %v3025_v35  ;;  %2621 = vmatpush3.bf16.msra.mxu0 %v2870_v50 }
  0x53   : > { %2622 = vmatprep.subr.bf16.mxu0 %v2872_v51 }
  0x55   : > { %2784 = vmatpush3.bf16.msra.mxu1 %v2868_v49 }
  0x56   : > { %2785 = vmatprep.subr.bf16.mxu1 %v3025_v35  ;;  %2623 = vmatpush3.bf16.msra.mxu0 %v2873_v53  ;;  %v2877_v53 = vld [vmem:[#allocation4] sm:$0xff]  }
  0x59   : > { %2786 = vmatpush3.bf16.msra.mxu1 %v2871_v52  ;;  %v2875_v52 = vld [vmem:[#allocation4 + $0x40] sm:$0xff]  }
  0x5a   : > { %2787 = vmatprep.subr.bf16.mxu1 %v3025_v35  ;;  %2624 = vmatprep.subr.bf16.mxu0 %v2875_v52  ;;  %v2906_v52 = vld [vmem:[%s3546_s5 + $0x40] sm:$0xff]  }
  0x5b   : > { %2625 = vmatpush3.bf16.msra.mxu0 %v2877_v53  ;;  %v2908_v53 = vld [vmem:[%s3546_s5 + $0xc0] sm:$0xff]  }
  0x5d   : > { %2788 = vmatpush3.bf16.msra.mxu1 %v2874_v54  ;;  %v746_v54 = vld [vmem:[#allocation2 + $0x4] sm:$0x1] }
  0xfd   : > { %v2604_v55 = vpop.f32.mrf.mxu0 }
  0xff   : > { %v2605_v56 = vpop.f32.mrf.mxu0 }
 0x100   : > { %v2606_v58 = vadd.f32 %v2605_v56, %v2604_v55  ;;  %v657_v59 = vpop.f32.mrf.mxu1 }
 0x101   : > { %v2607_v60 = vpop.f32.mrf.mxu0 }
 0x102   : > { %v617_v61 = vadd.f32 %v2606_v58, %v2404_v57  ;;  %v659_v62 = vpop.f32.mrf.mxu1  ;;  %v2852_v58 = vld [vmem:[#allocation2] ss:$0 sps:$4 sm:$0x77]  }
 0x103   : > { %v2608_v63 = vpop.f32.mrf.mxu0 }
 0x104   : > { %v658_v1 = vadd.f32 %v657_v59, %v617_v61  ;;  %v2609_v2 = vadd.f32 %v2608_v63, %v2607_v60  ;;  %v660_v3 = vpop.f32.mrf.mxu1  ;;  %v753_v63 = vshll.u32 %v2852_v58, 16 }
 0x106   : > { %v664_v4 = vmax.f32 %v658_v1, 0.0  ;;  %v620_v5 = vadd.f32 %v2609_v2, %v2404_v57  ;;  %v662_v6 = vpop.f32.mrf.mxu1  ;;  %v2851_v57 = vld [vmem:[#allocation2] ss:$0 sps:$4 sm:$0xee]   ;;  %v755_v35 = vrot.slane %v753_v63, 1 }
 0x107   : > { %v767_v61 = vshrl.u32 %v2851_v57, 16  ;;  %v770_v62 = vshll.u32 %v2851_v57, 16 }
 0x108   : > { %v668_v7 = vcombine.high %v664_v4, %v664_v4  ;;  %v673_v8 = vsel %vm672_vm5, %v664_v4, -inf  ;;  %v661_v9 = vadd.f32 %v660_v3, %v620_v5 }
 0x109   : > { %v674_v10 = vrot.slane %v673_v8, 4  ;;  %v769_v3 = vrot.slane %v767_v61, 1  ;;  %v772_v4 = vrot.slane %v770_v62, 2 }
 0x10a   : > { %v680_v11 = vsel %vm672_vm5, %v668_v7, -inf  ;;  %v665_v12 = vmax.f32 %v661_v9, 0.0  ;;  %v751_v7 = vshrl.u32 %v2852_v58, 16 }
 0x10b   : > { %v675_v13 = vmax.f32 %v673_v8, %v674_v10  ;;  %v681_v14 = vrot.slane %v680_v11, 4  ;;  %v773_v6 = vor.u32 %v772_v4, %v769_v3  ;;  %v2876_v10 = vld [vmem:[#allocation2] ss:$0 sps:$4 sm:$0x66]  }
 0x10c   : > { %v669_v15 = vcombine.high %v665_v12, %v665_v12  ;;  %v687_v16 = vsel %vm672_vm5, %v665_v12, -inf  ;;  %v756_v8 = vor.u32 %v755_v35, %v751_v7  ;;  %v762_v12 = vrot.slane %v2876_v10, 1 }
 0x10d   : > { %v676_v17 = vrot.slane %v675_v13, 2  ;;  %v682_v18 = vmax.f32 %v680_v11, %v681_v14  ;;  %v688_v19 = vrot.slane %v687_v16, 4  ;;  %774 = vrot.lane.b32.xlu0 %v773_v6, %s3027_s18 }
 0x10e   : > { %v694_v20 = vsel %vm672_vm5, %v669_v15, -inf }
 0x10f   : > { %v677_v21 = vmax.f32 %v675_v13, %v676_v17  ;;  %v683_v22 = vrot.slane %v682_v18, 2  ;;  %v689_v23 = vmax.f32 %v687_v16, %v688_v19  ;;  %v695_v24 = vrot.slane %v694_v20, 4 }
 0x111   : > { %v678_v25 = vrot.slane %v677_v21, 1  ;;  %v684_v26 = vmax.f32 %v682_v18, %v683_v22  ;;  %v690_v27 = vrot.slane %v689_v23, 2  ;;  %v696_v28 = vmax.f32 %v694_v20, %v695_v24  ;;  %757 = vrot.lane.b32.xlu0 %v756_v8, %s3027_s18  ;;  %v2878_v20 = vld [vmem:[%s3546_s5 + $0x78] sm:$0xff]   ;;  %v2882_v24 = vld [vmem:[%s3546_s5 + $0x70] sm:$0xff]  }
 0x112   : > { %v2880_v22 = vld [vmem:[%s3546_s5 + $0xf8] sm:$0xff]   ;;  %2641 = vmatprep.subr.bf16.mxu0 %v2878_v20 }
 0x113   : > { %v679_v29 = vmax.f32 %v677_v21, %v678_v25  ;;  %v685_v30 = vrot.slane %v684_v26, 1  ;;  %v691_v31 = vmax.f32 %v689_v23, %v690_v27  ;;  %v697_v32 = vrot.slane %v696_v28, 2  ;;  %v2879_v21 = vld [vmem:[%s3546_s5 + $0x38] sm:$0xff]   ;;  %2663 = vmatprep.subr.bf16.mxu1 %v2880_v22  ;;  %v2883_v25 = vld [vmem:[%s3546_s5 + $0x30] sm:$0xff]  }
 0x114   : > { %v2881_v23 = vld [vmem:[%s3546_s5 + $0xb8] sm:$0xff]   ;;  %v2885_v27 = vld [vmem:[%s3546_s5 + $0xb0] sm:$0xff]  }
 0x115   : > { %v686_v33 = vmax.f32 %v684_v26, %v685_v30  ;;  %v2582_v34 = vpack.c.bf16 %v679_v29, %v679_v29  ;;  %v692_v36 = vrot.slane %v691_v31, 1  ;;  %v698_v37 = vmax.f32 %v696_v28, %v697_v32  ;;  %v2884_v26 = vld [vmem:[%s3546_s5 + $0xf0] sm:$0xff]   ;;  %v2886_v28 = vld [vmem:[%s3546_s5 + $0x68] sm:$0xff]   ;;  %v2890_v32 = vld [vmem:[%s3546_s5 + $0x60] sm:$0xff]  }
 0x116   : > { %v2887_v29 = vld [vmem:[%s3546_s5 + $0x28] sm:$0xff]  }
 0x117   : > { %v2583_v38 = vpack.c.bf16 %v686_v33, %v686_v33  ;;  %v693_v39 = vmax.f32 %v691_v31, %v692_v36  ;;  %v699_v40 = vrot.slane %v698_v37, 1  ;;  %v719_v41 = vunpack.c.l.b16 %v2582_v34  ;;  %v2888_v30 = vld [vmem:[%s3546_s5 + $0xe8] sm:$0xff]   ;;  %v2891_v33 = vld [vmem:[%s3546_s5 + $0x20] sm:$0xff]  }
 0x118   : > { %v2889_v31 = vld [vmem:[%s3546_s5 + $0xa8] sm:$0xff]   ;;  %v2892_v34 = vld [vmem:[%s3546_s5 + $0xe0] sm:$0xff]  }
 0x119   : > { %v720_v42 = vunpack.c.l.b16 %v2583_v38  ;;  %v700_v43 = vmax.f32 %v698_v37, %v699_v40  ;;  %v2584_v44 = vpack.c.bf16 %v693_v39, %v693_v39  ;;  %v2893_v36 = vld [vmem:[%s3546_s5 + $0xa0] sm:$0xff]   ;;  %v2894_v37 = vld [vmem:[%s3546_s5 + $0x58] sm:$0xff]  }
 0x11a   : > { %v2895_v38 = vld [vmem:[%s3546_s5 + $0x18] sm:$0xff]  }
 0x11b   : > { %v724_v45 = vsel %vm723_vm6, %v720_v42, %v719_v41  ;;  %v2585_v46 = vpack.c.bf16 %v700_v43, %v700_v43  ;;  %v721_v47 = vunpack.c.l.b16 %v2584_v44  ;;  %v2896_v39 = vld [vmem:[%s3546_s5 + $0xd8] sm:$0xff]   ;;  %v2898_v41 = vld [vmem:[%s3546_s5 + $0x50] sm:$0xff]  }
 0x11c   : > { %v2897_v40 = vld [vmem:[%s3546_s5 + $0x98] sm:$0xff]   ;;  %v2900_v42 = vld [vmem:[%s3546_s5 + $0xd0] sm:$0xff]  }
 0x11d   : > { %v722_v48 = vunpack.c.l.b16 %v2585_v46  ;;  %v726_v49 = vsel %vm725_vm7, %v721_v47, %v724_v45  ;;  %v2899_v43 = vld [vmem:[%s3546_s5 + $0x10] sm:$0xff]   ;;  %v2902_v45 = vld [vmem:[%s3546_s5 + $0x48] sm:$0xff]  }
 0x11e   : > { %v2901_v44 = vld [vmem:[%s3546_s5 + $0x90] sm:$0xff]   ;;  %v2904_v46 = vld [vmem:[%s3546_s5 + $0xc8] sm:$0xff]  }
 0x11f   : > { %v728_v50 = vsel %vm727_vm8, %v722_v48, %v726_v49  ;;  %v1097_v48 = vld [vmem:[#allocation3 + $0x4] sm:$0x1] }
 0x120   : > { %v729_v51 = vpack.c.b16 %v728_v50, %v728_v50  ;;  %v2903_v49 = vld [vmem:[%s3546_s5 + $0x8] sm:$0xff]   ;;  %v1098_v50 = vsel %vm3300_vm13, 0, %v1097_v48 }
 0x121   : > { %1099 = vst [vmem:[#allocation3 + $0x4] sm:$0x1] %v1098_v50  ;;  %v2930_v50 = vld [vmem:[%s3548_s7 + $0x78] sm:$0xff]  }
 0x122   : > { %732 = vst.msk [vmem:[#allocation2] sm:$0x6] %vm731_vm9, %v729_v51  ;;  %v2905_v51 = vld [vmem:[%s3546_s5 + $0x88] sm:$0xff]  }
 0x128   : > { %v1672_v57 = vld [vmem:[#allocation3 + $0x4] sm:$0x1] }
 0x129   : > { %v745_v55 = vld [vmem:[#allocation2] sm:$0xc]  ;;  %v741_v18 = vld [vmem:[#allocation2] sm:$0x3]  ;;  %v1105_v58 = vld [vmem:[#allocation3 + $0x4] sm:$0x1] }
 0x12a   : > { %v2443_v56 = vcombine.low %v745_v55, %v746_v54  ;;  %v2442_v9 = vcombine.low %v745_v55, %v745_v55  ;;  %v2907_v54 = vld [vmem:[%s3546_s5] sm:$0xff]  }
 0x12b   : > { %v2909_v55 = vld [vmem:[%s3546_s5 + $0x80] sm:$0xff]  }
 0x12c   : > { %v784_v59 = vshrl.u32 %v2443_v56, 16  ;;  %v787_v60 = vshll.u32 %v2443_v56, 16  ;;  %v779_v11 = vrot.slane %v2442_v9, 2  ;;  %v2912_v56 = vld [vmem:[%s3546_s5 + $0x178] sm:$0xff]  }
 0x12e   : > { %v786_v1 = vrot.slane %v784_v59, 2  ;;  %v789_v2 = vrot.slane %v787_v60, 3  ;;  %v1673_v59 = vsel %vm3300_vm13, 0, %v1672_v57  ;;  %v2937_v57 = vld [vmem:[%s3548_s7 + $0xb0] sm:$0xff]  }
 0x12f   : > { %1674 = vst [vmem:[#allocation3 + $0x4] sm:$0x1] %v1673_v59  ;;  %v2939_v59 = vld [vmem:[%s3548_s7 + $0x28] sm:$0xff]  }
 0x130   : > { %v790_v5 = vor.u32 %v789_v2, %v786_v1  ;;  %v2444_v1 = vld [vmem:[%s3545_s4] ss:$0 sm:$0xff] }
 0x132   : > { %791 = vrot.lane.b32.xlu1 %v790_v5, %s3027_s18 }
 0x17f   : > { %v775_v14 = vpop.permute.xlu0 %774 }
 0x180   : > { %v800_v16 = vsel %vm793_vm11, %v762_v12, %v775_v14  ;;  %v2911_v12 = vld [vmem:[#allocation3] ss:$0 sps:$4 sm:$0xee]  }
 0x181   : > { %1037 = vmatprep.mubr.bf16.mxu0 %v800_v16  ;;  %v1126_v16 = vshrl.u32 %v2911_v12, 16 }
 0x183   : > { %v758_v17 = vpop.permute.xlu0 %757 }
 0x184   : > { %v796_v19 = vsel %vm793_vm11, %v741_v18, %v758_v17  ;;  %v1129_v17 = vshll.u32 %v2911_v12, 16  ;;  %v2955_v12 = vld [vmem:[%s3548_s7 + $0x8] sm:$0xff]  }
 0x185   : > { %1038 = vmatmul.mubr.bf16.vlgmr.msra.gmra.mxu0 %v796_v19  ;;  %v2913_v19 = vld [vmem:[#allocation3] ss:$0 sps:$4 sm:$0x66]  }
 0x186   : > { %2642 = vmatpush3.bf16.msra.mxu0 %v2879_v21  ;;  %v1128_v21 = vrot.slane %v1126_v16, 1  ;;  %v1131_v22 = vrot.slane %v1129_v17, 2  ;;  %v2959_v16 = vld [vmem:[%s3548_s7] sm:$0xff]  }
 0x187   : > { %2643 = vmatprep.subr.bf16.mxu0 %v2882_v24  ;;  %v2961_v17 = vld [vmem:[%s3548_s7 + $0x80] sm:$0xff]  }
 0x18a   : > { %2644 = vmatpush3.bf16.msra.mxu0 %v2883_v25  ;;  %v2914_v25 = vld [vmem:[%s3546_s5 + $0x138] sm:$0xff]  }
 0x18b   : > { %2645 = vmatprep.subr.bf16.mxu0 %v2886_v28 }
 0x18e   : > { %2646 = vmatpush3.bf16.msra.mxu0 %v2887_v29  ;;  %v2916_v29 = vld [vmem:[%s3546_s5 + $0x170] sm:$0xff]  }
 0x18f   : > { %2647 = vmatprep.subr.bf16.mxu0 %v2890_v32 }
 0x192   : > { %2648 = vmatpush3.bf16.msra.mxu0 %v2891_v33 }
 0x193   : > { %2649 = vmatprep.subr.bf16.mxu0 %v2894_v37  ;;  %v2920_v37 = vld [vmem:[%s3546_s5 + $0x160] sm:$0xff]  }
 0x196   : > { %2650 = vmatpush3.bf16.msra.mxu0 %v2895_v38  ;;  %v2921_v38 = vld [vmem:[%s3546_s5 + $0x120] sm:$0xff]  }
 0x197   : > { %2651 = vmatprep.subr.bf16.mxu0 %v2898_v41  ;;  %v2924_v41 = vld [vmem:[%s3546_s5 + $0x150] sm:$0xff]  }
 0x19a   : > { %2652 = vmatpush3.bf16.msra.mxu0 %v2899_v43  ;;  %v2926_v43 = vld [vmem:[%s3546_s5 + $0x148] sm:$0xff]  }
 0x19b   : > { %2653 = vmatprep.subr.bf16.mxu0 %v2902_v45  ;;  %v2928_v45 = vld [vmem:[%s3546_s5 + $0x140] sm:$0xff]  }
 0x19e   : > { %2654 = vmatpush3.bf16.msra.mxu0 %v2903_v49 }
 0x19f   : > { %2655 = vmatprep.subr.bf16.mxu0 %v2906_v52  ;;  %v2932_v52 = vld [vmem:[%s3548_s7 + $0xf8] sm:$0xff]  }
 0x1a2   : > { %2656 = vmatpush3.bf16.msra.mxu0 %v2907_v54  ;;  %v2934_v54 = vld [vmem:[%s3548_s7 + $0x70] sm:$0xff]  }
 0x1a3   : > { %2685 = vmatprep.subr.bf16.mxu0 %v2912_v56  ;;  %v2936_v56 = vld [vmem:[%s3548_s7 + $0xf0] sm:$0xff]  }
 0x1a4   : > { %v792_v13 = vpop.permute.xlu1 %791 }
 0x1a5   : > { %v804_v15 = vsel %vm793_vm11, %v779_v11, %v792_v13  ;;  %v2910_v11 = vld [vmem:[#allocation3] ss:$0 sps:$4 sm:$0x77]  }
 0x1a6   : > { %2790 = vmatmul.mubr.bf16.vlgmr.msra.gmra.mxu1 %v804_v15  ;;  %v1112_v13 = vshll.u32 %v2910_v11, 16  ;;  %v1110_v15 = vshrl.u32 %v2910_v11, 16  ;;  %v2956_v11 = vld [vmem:[%s3548_s7 + $0xc8] sm:$0xff]  }
 0x1a7   : > { %2664 = vmatpush3.bf16.msra.mxu1 %v2881_v23 }
 0x1a8   : > { %2665 = vmatprep.subr.bf16.mxu1 %v2884_v26  ;;  %v1114_v18 = vrot.slane %v1112_v13, 1  ;;  %v1132_v26 = vor.u32 %v1131_v22, %v1128_v21  ;;  %v2957_v13 = vld [vmem:[%s3548_s7 + $0x88] sm:$0xff]  }
 0x1aa   : > { %v1115_v24 = vor.u32 %v1114_v18, %v1110_v15  ;;  %1614 = vmatprep.mubr.bf16.mxu1 %v1132_v26  ;;  %v2960_v15 = vld [vmem:[%s3548_s7 + $0xc0] sm:$0xff]   ;;  %v2964_v18 = vld [vmem:[%s3548_s7 + $0x178] sm:$0xff]  }
 0x1ab   : > { %2666 = vmatpush3.bf16.msra.mxu1 %v2885_v27 }
 0x1ac   : > { %2667 = vmatprep.subr.bf16.mxu1 %v2888_v30  ;;  %1574 = vmatprep.mubr.bf16.mxu0 %v1115_v24  ;;  %v1120_v30 = vrot.slane %v2913_v19, 1 }
 0x1af   : > { %2668 = vmatpush3.bf16.msra.mxu1 %v2889_v31 }
 0x1b0   : > { %2669 = vmatprep.subr.bf16.mxu1 %v2892_v34  ;;  %v2918_v34 = vld [vmem:[%s3546_s5 + $0x168] sm:$0xff]  }
 0x1b3   : > { %2670 = vmatpush3.bf16.msra.mxu1 %v2893_v36  ;;  %v2919_v36 = vld [vmem:[%s3546_s5 + $0x128] sm:$0xff]  }
 0x1b4   : > { %2671 = vmatprep.subr.bf16.mxu1 %v2896_v39  ;;  %v2922_v39 = vld [vmem:[%s3546_s5 + $0x158] sm:$0xff]  }
 0x1b7   : > { %2672 = vmatpush3.bf16.msra.mxu1 %v2897_v40  ;;  %v2923_v40 = vld [vmem:[%s3546_s5 + $0x118] sm:$0xff]  }
 0x1b8   : > { %2673 = vmatprep.subr.bf16.mxu1 %v2900_v42  ;;  %v2925_v42 = vld [vmem:[%s3546_s5 + $0x110] sm:$0xff]  }
 0x1bb   : > { %2674 = vmatpush3.bf16.msra.mxu1 %v2901_v44  ;;  %v2927_v44 = vld [vmem:[%s3546_s5 + $0x108] sm:$0xff]  }
 0x1bc   : > { %2675 = vmatprep.subr.bf16.mxu1 %v2904_v46  ;;  %v2929_v46 = vld [vmem:[%s3546_s5 + $0x100] sm:$0xff]  }
 0x1bf   : > { %2676 = vmatpush3.bf16.msra.mxu1 %v2905_v51  ;;  %v2931_v51 = vld [vmem:[%s3548_s7 + $0x38] sm:$0xff]  }
 0x1c0   : > { %2677 = vmatprep.subr.bf16.mxu1 %v2908_v53  ;;  %v2933_v53 = vld [vmem:[%s3548_s7 + $0xb8] sm:$0xff]  }
 0x1c3   : > { %2678 = vmatpush3.bf16.msra.mxu1 %v2909_v55  ;;  %v2935_v55 = vld [vmem:[%s3548_s7 + $0x30] sm:$0xff]  }
 0x1c4   : > { %2707 = vmatprep.subr.bf16.mxu1 %v2930_v50  ;;  %v2965_v50 = vld [vmem:[#allocation3] ss:$0 sps:$4 sm:$0x66]  }
 0x1c6   : > { %1615 = vmatmul.mubr.bf16.vlgmr.msra.gmra.mxu1 %v1120_v30 }
 0x1c7   : > { %2708 = vmatpush3.bf16.msra.mxu1 %v2931_v51 }
 0x1c8   : > { %2709 = vmatprep.subr.bf16.mxu1 %v2934_v54 }
 0x1cb   : > { %2710 = vmatpush3.bf16.msra.mxu1 %v2935_v55 }
 0x245   : > { %v2626_v62 = vpop.f32.mrf.mxu0 }
 0x247   : > { %v2627_v2 = vpop.f32.mrf.mxu0 }
 0x248   : > { %v2628_v4 = vadd.f32 %v2627_v2, %v2626_v62  ;;  %v2942_v62 = vld [vmem:[%s3548_s7 + $0x60] sm:$0xff]  }
 0x249   : > { %v2629_v5 = vpop.f32.mrf.mxu0  ;;  %v2945_v2 = vld [vmem:[%s3548_s7 + $0xa0] sm:$0xff]  }
 0x24a   : > { %v1040_v6 = vadd.f32 %v2628_v4, %v2444_v1  ;;  %v2944_v1 = vld [vmem:[%s3548_s7 + $0xe0] sm:$0xff]   ;;  %v2947_v4 = vld [vmem:[%s3548_s7 + $0x18] sm:$0xff]  }
 0x24b   : > { %v2630_v35 = vpop.f32.mrf.mxu0  ;;  %v2948_v5 = vld [vmem:[%s3548_s7 + $0xd8] sm:$0xff]  }
 0x24c   : > { %v2950_v35 = vld [vmem:[%s3548_s7 + $0x50] sm:$0xff]  }
 0x266   : > { %v1079_v60 = vpop.f32.mrf.mxu1 }
 0x267   : > { %v1080_v7 = vadd.f32 %v1079_v60, %v1040_v6  ;;  %v2940_v60 = vld [vmem:[%s3548_s7 + $0xe8] sm:$0xff]   ;;  %v2949_v6 = vld [vmem:[%s3548_s7 + $0x98] sm:$0xff]  }
 0x268   : > { %v2791_v61 = vpop.f32.mrf.mxu1 }
 0x269   : > { %v1085_v8 = vmax.f32 %v1080_v7, 0.0  ;;  %v2941_v61 = vld [vmem:[%s3548_s7 + $0xa8] sm:$0xff]   ;;  %v2952_v7 = vld [vmem:[%s3548_s7 + $0xd0] sm:$0xff]  }
 0x26a   : > { %v1082_v63 = vpop.f32.mrf.mxu1 }
 0x26b   : > { %v2586_v9 = vpack.c.bf16 %v1085_v8, %v1085_v8  ;;  %v2943_v63 = vld [vmem:[%s3548_s7 + $0x20] sm:$0xff]   ;;  %v2951_v8 = vld [vmem:[%s3548_s7 + $0x10] sm:$0xff]  }
 0x26c   : > { %v2792_v3 = vpop.f32.mrf.mxu1 }
 0x26d   : > { %v1091_v10 = vrot.slane %v2586_v9, 7  ;;  %v2946_v3 = vld [vmem:[%s3548_s7 + $0x58] sm:$0xff]   ;;  %v2953_v9 = vld [vmem:[%s3548_s7 + $0x90] sm:$0xff]  }
 0x26f   : > { %1093 = vst [vmem:[#allocation3] sm:$0x6] %v1091_v10  ;;  %v2954_v10 = vld [vmem:[%s3548_s7 + $0x48] sm:$0xff]  }
 0x276   : > { %v1100_v14 = vld [vmem:[#allocation3] sm:$0x3]  ;;  %v1104_v20 = vld [vmem:[#allocation3] sm:$0xc] }
 0x277   : > { %1664 = vst [vmem:[#allocation3] sm:$0x1] %v3024_v0  ;;  %v2474_v23 = vcombine.low %v1104_v20, %v1105_v58  ;;  %1671 = vst [vmem:[#allocation3] sm:$0x8] %v3024_v0  ;;  %1575 = vmatmul.mubr.bf16.vlgmr.msra.gmra.mxu0 %v1100_v14  ;;  %v2917_v0 = vld [vmem:[%s3546_s5 + $0x130] sm:$0xff]   ;;  %v2473_v48 = vcombine.low %v1104_v20, %v1104_v20  ;;  %v2938_v58 = vld [vmem:[%s3548_s7 + $0x68] sm:$0xff]  }
 0x278   : > { %2686 = vmatpush3.bf16.msra.mxu0 %v2914_v25  ;;  %2711 = vmatprep.subr.bf16.mxu1 %v2938_v58  ;;  %v2958_v14 = vld [vmem:[%s3548_s7 + $0x40] sm:$0xff]  }
 0x279   : > { %v1143_v27 = vshrl.u32 %v2474_v23, 16  ;;  %v1146_v28 = vshll.u32 %v2474_v23, 16  ;;  %2687 = vmatprep.subr.bf16.mxu0 %v2916_v29  ;;  %v1137_v49 = vrot.slane %v2473_v48, 2  ;;  %2712 = vmatpush3.bf16.msra.mxu1 %v2939_v59 }
 0x27a   : > { %2713 = vmatprep.subr.bf16.mxu1 %v2942_v62  ;;  %v1695_v62 = vrot.slane %v2965_v50, 1 }
 0x27b   : > { %v1145_v31 = vrot.slane %v1143_v27, 2  ;;  %v1148_v32 = vrot.slane %v1146_v28, 3  ;;  %v2475_v28 = vld [vmem:[%s3547_s6] ss:$0 sm:$0xff] }
 0x27c   : > { %2688 = vmatpush3.bf16.msra.mxu0 %v2917_v0 }
 0x27d   : > { %v1149_v33 = vor.u32 %v1148_v32, %v1145_v31  ;;  %2689 = vmatprep.subr.bf16.mxu0 %v2918_v34  ;;  %2714 = vmatpush3.bf16.msra.mxu1 %v2943_v63 }
 0x27e   : > { %2715 = vmatprep.subr.bf16.mxu1 %v2946_v3 }
 0x27f   : > { %1654 = vmatprep.mubr.bf16.mxu0 %v1149_v33 }
 0x280   : > { %2690 = vmatpush3.bf16.msra.mxu0 %v2919_v36 }
 0x281   : > { %2691 = vmatprep.subr.bf16.mxu0 %v2920_v37  ;;  %2716 = vmatpush3.bf16.msra.mxu1 %v2947_v4  ;;  %v2970_v4 = vld [vmem:[%s3548_s7 + $0x168] sm:$0xff]  }
 0x282   : > { %2717 = vmatprep.subr.bf16.mxu1 %v2950_v35  ;;  %v2973_v35 = vld [vmem:[%s3548_s7 + $0x120] sm:$0xff]  }
 0x284   : > { %2692 = vmatpush3.bf16.msra.mxu0 %v2921_v38 }
 0x285   : > { %2693 = vmatprep.subr.bf16.mxu0 %v2922_v39  ;;  %2718 = vmatpush3.bf16.msra.mxu1 %v2951_v8  ;;  %v2975_v8 = vld [vmem:[%s3548_s7 + $0x118] sm:$0xff]  }
 0x286   : > { %2719 = vmatprep.subr.bf16.mxu1 %v2954_v10  ;;  %v2679_v20 = vpop.f32.mrf.mxu1  ;;  %v2977_v10 = vld [vmem:[%s3548_s7 + $0x110] sm:$0xff]  }
 0x288   : > { %2694 = vmatpush3.bf16.msra.mxu0 %v2923_v40  ;;  %v2680_v22 = vpop.f32.mrf.mxu1 }
 0x289   : > { %2695 = vmatprep.subr.bf16.mxu0 %v2924_v41  ;;  %2720 = vmatpush3.bf16.msra.mxu1 %v2955_v12  ;;  %v2681_v31 = vadd.f32 %v2680_v22, %v2679_v20  ;;  %v2962_v41 = vld [vmem:[#allocation3] ss:$0 sps:$4 sm:$0x77]  }
 0x28a   : > { %2721 = vmatprep.subr.bf16.mxu1 %v2958_v14  ;;  %v2682_v24 = vpop.f32.mrf.mxu1  ;;  %v2979_v12 = vld [vmem:[%s3548_s7 + $0x108] sm:$0xff]   ;;  %v2981_v14 = vld [vmem:[%s3548_s7 + $0x100] sm:$0xff]  }
 0x28c   : > { %2696 = vmatpush3.bf16.msra.mxu0 %v2925_v42  ;;  %v2683_v26 = vpop.f32.mrf.mxu1  ;;  %v2963_v42 = vld [vmem:[#allocation3] ss:$0 sps:$4 sm:$0xee]  }
 0x28d   : > { %2697 = vmatprep.subr.bf16.mxu0 %v2926_v43  ;;  %2722 = vmatpush3.bf16.msra.mxu1 %v2959_v16  ;;  %v1687_v43 = vshll.u32 %v2962_v41, 16  ;;  %v1704_v48 = vshll.u32 %v2963_v42, 16  ;;  %v2530_v26 = vld [vmem:[%s3549_s8] ss:$0 sm:$0xff] }
 0x28e   : > { %2751 = vmatprep.subr.bf16.mxu1 %v2964_v18 }
 0x290   : > { %2698 = vmatpush3.bf16.msra.mxu0 %v2927_v44  ;;  %v1680_v44 = vld [vmem:[#allocation3 + $0x4] sm:$0x1] }
 0x291   : > { %2699 = vmatprep.subr.bf16.mxu0 %v2928_v45  ;;  %v1685_v45 = vshrl.u32 %v2962_v41, 16 }
 0x294   : > { %2700 = vmatpush3.bf16.msra.mxu0 %v2929_v46  ;;  %v1701_v46 = vshrl.u32 %v2963_v42, 16 }
 0x295   : > { %2729 = vmatprep.subr.bf16.mxu0 %v2932_v52 }
 0x296   : > { %v1703_v52 = vrot.slane %v1701_v46, 1 }
 0x297   : > { %1655 = vmatmul.mubr.bf16.vlgmr.msra.gmra.mxu0 %v1137_v49  ;;  %v1689_v49 = vrot.slane %v1687_v43, 1 }
 0x298   : > { %2730 = vmatpush3.bf16.msra.mxu0 %v2933_v53  ;;  %v1706_v53 = vrot.slane %v1704_v48, 2 }
 0x299   : > { %2731 = vmatprep.subr.bf16.mxu0 %v2936_v56  ;;  %v1690_v55 = vor.u32 %v1689_v49, %v1685_v45  ;;  %v2966_v56 = vld [vmem:[%s3548_s7 + $0x138] sm:$0xff]  }
 0x29b   : > { %2149 = vmatprep.mubr.bf16.mxu1 %v1690_v55 }
 0x29c   : > { %2732 = vmatpush3.bf16.msra.mxu0 %v2937_v57  ;;  %v1707_v57 = vor.u32 %v1706_v53, %v1703_v52 }
 0x29d   : > { %2733 = vmatprep.subr.bf16.mxu0 %v2940_v60  ;;  %v2968_v60 = vld [vmem:[%s3548_s7 + $0x170] sm:$0xff]  }
 0x29e   : > { %2189 = vmatprep.mubr.bf16.mxu0 %v1707_v57 }
 0x2a0   : > { %2734 = vmatpush3.bf16.msra.mxu0 %v2941_v61 }
 0x2a1   : > { %2735 = vmatprep.subr.bf16.mxu0 %v2944_v1 }
 0x2a4   : > { %2736 = vmatpush3.bf16.msra.mxu0 %v2945_v2  ;;  %v2969_v2 = vld [vmem:[%s3548_s7 + $0x130] sm:$0xff]  }
 0x2a5   : > { %2737 = vmatprep.subr.bf16.mxu0 %v2948_v5  ;;  %v2971_v5 = vld [vmem:[%s3548_s7 + $0x128] sm:$0xff]  }
 0x2a8   : > { %2738 = vmatpush3.bf16.msra.mxu0 %v2949_v6  ;;  %v2972_v6 = vld [vmem:[%s3548_s7 + $0x160] sm:$0xff]  }
 0x2a9   : > { %2739 = vmatprep.subr.bf16.mxu0 %v2952_v7  ;;  %v2974_v7 = vld [vmem:[%s3548_s7 + $0x158] sm:$0xff]  }
 0x2ac   : > { %2740 = vmatpush3.bf16.msra.mxu0 %v2953_v9  ;;  %v2976_v9 = vld [vmem:[%s3548_s7 + $0x150] sm:$0xff]  }
 0x2ad   : > { %2741 = vmatprep.subr.bf16.mxu0 %v2956_v11  ;;  %v2978_v11 = vld [vmem:[%s3548_s7 + $0x148] sm:$0xff]  }
 0x2b0   : > { %2742 = vmatpush3.bf16.msra.mxu0 %v2957_v13  ;;  %v2980_v13 = vld [vmem:[%s3548_s7 + $0x140] sm:$0xff]  }
 0x2b1   : > { %2743 = vmatprep.subr.bf16.mxu0 %v2960_v15 }
 0x2b4   : > { %2744 = vmatpush3.bf16.msra.mxu0 %v2961_v17 }
 0x2b7   : > { %2190 = vmatmul.mubr.bf16.vlgmr.msra.gmra.mxu0 %v1695_v62 }
 0x337   : > { %v2657_v19 = vpop.f32.mrf.mxu0 }
 0x339   : > { %v2658_v21 = vpop.f32.mrf.mxu0 }
 0x33a   : > { %v2659_v27 = vadd.f32 %v2658_v21, %v2657_v19 }
 0x33b   : > { %v2660_v23 = vpop.f32.mrf.mxu0 }
 0x33c   : > { %v1577_v29 = vadd.f32 %v2659_v27, %v2475_v28 }
 0x33d   : > { %v2661_v25 = vpop.f32.mrf.mxu0 }
 0x33e   : > { %v1617_v0 = vadd.f32 %v2681_v31, %v1577_v29 }
 0x357   : > { %v2701_v30 = vpop.f32.mrf.mxu0 }
 0x359   : > { %v2702_v32 = vpop.f32.mrf.mxu0 }
 0x35a   : > { %v2703_v33 = vadd.f32 %v2702_v32, %v2701_v30 }
 0x35b   : > { %v2704_v34 = vpop.f32.mrf.mxu0 }
 0x35c   : > { %v1657_v36 = vadd.f32 %v2703_v33, %v1617_v0 }
 0x35d   : > { %v2705_v37 = vpop.f32.mrf.mxu0 }
 0x35e   : > { %v1662_v38 = vmax.f32 %v1657_v36, 0.0  ;;  %v3028_v37 = vmov 1966171168  }
 0x360   : > { %v2587_v39 = vpack.c.bf16 %v1662_v38, %v1662_v38  ;;  %v2254_v38 = vunpack.c.l.s4 %v3028_v37 }
 0x362   : > { %v1668_v40 = vrot.slane %v2587_v39, 7  ;;  %v2256_v39 = vlaneseq  ;;  %v2255_v42 = vunpack.c.0.s8 %v2254_v38 }
 0x364   : > { %1670 = vst [vmem:[#allocation3] sm:$0x6] %v1668_v40  ;;  %v2257_v43 = vshrl.u32 %v2256_v39, 7 }
 0x366   : > { %v2258_v48 = vsub.s32 %v2255_v42, %v2257_v43 }
 0x36b   : > { %v1679_v51 = vld [vmem:[#allocation3] sm:$0xc]  ;;  %v1675_v61 = vld [vmem:[#allocation3] sm:$0x3] }
 0x36c   : > { %v2529_v54 = vcombine.low %v1679_v51, %v1680_v44  ;;  %2150 = vmatmul.mubr.bf16.vlgmr.msra.gmra.mxu1 %v1675_v61  ;;  %v2528_v15 = vcombine.low %v1679_v51, %v1679_v51 }
 0x36d   : > { %2752 = vmatpush3.bf16.msra.mxu1 %v2966_v56 }
 0x36e   : > { %v1718_v58 = vshrl.u32 %v2529_v54, 16  ;;  %v1721_v59 = vshll.u32 %v2529_v54, 16  ;;  %2753 = vmatprep.subr.bf16.mxu1 %v2968_v60  ;;  %v1712_v16 = vrot.slane %v2528_v15, 2 }
 0x370   : > { %v1720_v63 = vrot.slane %v1718_v58, 2  ;;  %v1723_v1 = vrot.slane %v1721_v59, 3 }
 0x371   : > { %2754 = vmatpush3.bf16.msra.mxu1 %v2969_v2 }
 0x372   : > { %v1724_v3 = vor.u32 %v1723_v1, %v1720_v63  ;;  %2755 = vmatprep.subr.bf16.mxu1 %v2970_v4 }
 0x374   : > { %2229 = vmatprep.mubr.bf16.mxu1 %v1724_v3 }
 0x375   : > { %2756 = vmatpush3.bf16.msra.mxu1 %v2971_v5 }
 0x376   : > { %2757 = vmatprep.subr.bf16.mxu1 %v2972_v6 }
 0x377   : > { %v2745_v18 = vpop.f32.mrf.mxu0 }
 0x379   : > { %2758 = vmatpush3.bf16.msra.mxu1 %v2973_v35  ;;  %v2746_v20 = vpop.f32.mrf.mxu0 }
 0x37a   : > { %2759 = vmatprep.subr.bf16.mxu1 %v2974_v7  ;;  %v2747_v29 = vadd.f32 %v2746_v20, %v2745_v18 }
 0x37b   : > { %v2748_v22 = vpop.f32.mrf.mxu0 }
 0x37d   : > { %2760 = vmatpush3.bf16.msra.mxu1 %v2975_v8  ;;  %v2749_v24 = vpop.f32.mrf.mxu0 }
 0x37e   : > { %2761 = vmatprep.subr.bf16.mxu1 %v2976_v9 }
 0x381   : > { %2762 = vmatpush3.bf16.msra.mxu1 %v2977_v10 }
 0x382   : > { %2763 = vmatprep.subr.bf16.mxu1 %v2978_v11 }
 0x385   : > { %2764 = vmatpush3.bf16.msra.mxu1 %v2979_v12 }
 0x386   : > { %2765 = vmatprep.subr.bf16.mxu1 %v2980_v13 }
 0x389   : > { %2766 = vmatpush3.bf16.msra.mxu1 %v2981_v14 }
 0x38c   : > { %2230 = vmatmul.mubr.bf16.vlgmr.msra.gmra.mxu1 %v1712_v16 }
 0x42c   : > { %v2723_v17 = vpop.f32.mrf.mxu1 }
 0x42e   : > { %v2724_v19 = vpop.f32.mrf.mxu1 }
 0x42f   : > { %v2725_v25 = vadd.f32 %v2724_v19, %v2723_v17 }
 0x430   : > { %v2726_v21 = vpop.f32.mrf.mxu1 }
 0x431   : > { %v2152_v27 = vadd.f32 %v2725_v25, %v2530_v26 }
 0x432   : > { %v2727_v23 = vpop.f32.mrf.mxu1 }
 0x433   : > { %v2192_v31 = vadd.f32 %v2747_v29, %v2152_v27 }
 0x44c   : > { %v2767_v28 = vpop.f32.mrf.mxu1 }
 0x44e   : > { %v2768_v30 = vpop.f32.mrf.mxu1 }
 0x44f   : > { %v2769_v32 = vadd.f32 %v2768_v30, %v2767_v28 }
 0x450   : > { %v2770_v0 = vpop.f32.mrf.mxu1 }
 0x451   : > { %v2232_v33 = vadd.f32 %v2769_v32, %v2192_v31 }
 0x452   : > { %v2771_v34 = vpop.f32.mrf.mxu1 }
 0x453   : > { %v2237_v36 = vmax.f32 %v2232_v33, 0.0 }
 0x455   : > { %v2238_v40 = vpack.c.bf16 %v2237_v36, %v2237_v36 }
 0x457   : > { %v2240_v41 = vshrl.u32 %v2238_v40, 16  ;;  %v2243_v45 = vshll.u32 %v2238_v40, 16 }
 0x459   : > { %v2242_v44 = vrot.slane %v2240_v41, 7 }
 0x45b   : > { %v2245_v46 = vor.u32 %v2243_v45, %v2242_v44 }
 0x45d   : > { %v2247_v49 = vsel %vm3300_vm13, 0, %v2245_v46 }
 0x45e   : > { %v2251_v50 = vsel %vm2250_vm0, %v2247_v49, 0 }
 0x45f   : > { %v2259_v51 = vrot.slane %v2251_v50, %v2258_v48 }
 0x461   : > { %v2260_v52 = vcombine.high %v2259_v51, %v2259_v51  ;;  %v2267_v53 = vrot.slane %v2259_v51, %v2258_v48 }
 0x463   : > { %v2274_v54 = vrot.slane %v2260_v52, %v2258_v48  ;;  %v2275_v55 = vcombine.high %v2267_v53, %v2267_v53  ;;  %v2279_v56 = vsel %vm1095_vm12, %v2267_v53, 4286644096 }
 0x464   : > { %v2281_v57 = vunpack.i.l.bf16 %v2279_v56  ;;  %v2282_v58 = vunpack.i.h.bf16 %v2279_v56 }
 0x465   : > { %v2292_v59 = vsel %vm1095_vm12, %v2274_v54, 4286644096  ;;  %v2305_v60 = vsel %vm1095_vm12, %v2275_v55, 4286644096 }
 0x466   : > { %v2283_v61 = vmax.f32 %v2281_v57, %v2282_v58  ;;  %v2294_v62 = vunpack.i.l.bf16 %v2292_v59  ;;  %v2295_v63 = vunpack.i.h.bf16 %v2292_v59  ;;  %v2307_v1 = vunpack.i.l.bf16 %v2305_v60 }
 0x467   : > { %v2308_v47 = vunpack.i.h.bf16 %v2305_v60 }
 0x468   : > { %v2284_v2 = vrot.slane %v2283_v61, 4  ;;  %v2296_v3 = vmax.f32 %v2294_v62, %v2295_v63 }
 0x469   : > { %v2309_v4 = vmax.f32 %v2307_v1, %v2308_v47 }
 0x46a   : > { %v2285_v5 = vmax.f32 %v2283_v61, %v2284_v2  ;;  %v2297_v6 = vrot.slane %v2296_v3, 4 }
 0x46b   : > { %v2310_v35 = vrot.slane %v2309_v4, 4 }
 0x46c   : > { %v2286_v7 = vrot.slane %v2285_v5, 2  ;;  %v2298_v8 = vmax.f32 %v2296_v3, %v2297_v6 }
 0x46d   : > { %v2311_v9 = vmax.f32 %v2309_v4, %v2310_v35 }
 0x46e   : > { %v2287_v10 = vmax.f32 %v2285_v5, %v2286_v7  ;;  %v2299_v11 = vrot.slane %v2298_v8, 2 }
 0x46f   : > { %v2312_v12 = vrot.slane %v2311_v9, 2 }
 0x470   : > { %v2288_v13 = vrot.slane %v2287_v10, 1  ;;  %v2300_v14 = vmax.f32 %v2298_v8, %v2299_v11 }
 0x471   : > { %v2313_v15 = vmax.f32 %v2311_v9, %v2312_v12 }
 0x472   : > { %v2289_v16 = vmax.f32 %v2287_v10, %v2288_v13  ;;  %v2301_v17 = vrot.slane %v2300_v14, 1 }
 0x473   : > { %v2314_v18 = vrot.slane %v2313_v15, 1 }
 0x474   : > { %v2290_v19 = vpack.i.bf16 %v2289_v16, %v2289_v16  ;;  %v2302_v20 = vmax.f32 %v2300_v14, %v2301_v17 }
 0x475   : > { %v2315_v21 = vmax.f32 %v2313_v15, %v2314_v18 }
 0x476   : > { %v2303_v22 = vpack.i.bf16 %v2302_v20, %v2302_v20  ;;  %v2317_v24 = vunpack.c.l.bf16 %v2290_v19 }
 0x477   : > { %v2316_v23 = vpack.i.bf16 %v2315_v21, %v2315_v21 }
 0x478   : > { %v2318_v25 = vunpack.c.l.bf16 %v2303_v22 }
 0x479   : > { %v2319_v26 = vunpack.c.l.bf16 %v2316_v23 }
 0x47a   : > { %v2324_v27 = vsel %vm2323_vm1, %v2318_v25, %v2317_v24 }
 0x47b   : > { %v2326_v28 = vsel %vm2325_vm2, %v2319_v26, %v2324_v27 }
 0x47c   : > { %2328 = vst [vmem:[%s345_s11] sm:$0x7] %v2326_v28 }
 0x47d PF: > { %s20_s30 = sadd.s32 1, %s3019_s30  }
 0x47e   : > { %p17_p1 = scmp.ge.s32.totalorder %s20_s30, 4  }
 0x480   :  { %19 = sbr.rel (!%p17_p1) target bundleno = 1 (0x1), region = 91 }
 0x485   :  { %2348 = vsyncpa [#allocation5], 1 }
 0x486   :  { %2350 = vsyncpa [#allocation5 + $0x1], 1 }

</bundles_post_ra>
